<compile_context>
chip_gen: v5e
topology: v5e:2x2
jax: 0.10.0
libtpu: 0.0.40
codegen_flags: <defaults>
</compile_context>

<pallas_src>
from functools import partial

import jax
import jax.numpy as jnp
import numpy as np
from jax.experimental import pallas as pl
from jax.experimental.pallas import tpu as pltpu


def _up_pool_kernel(x_ref, w_ref, b_ref, *rest, pool, block_h, l_tile, has_skip):
    # x_ref:     (1, H, L_tile)          x columns [li*L_tile, (li+1)*L_tile)
    # w_ref:     (1, pool*block_h, H)    rows ordered s-major inside the h-tile
    # b_ref:     (1, pool*block_h, 1)    f32 bias, same ordering
    # skip_ref:  (1, block_h, LP_tile)   optional
    # o_ref:     (1, block_h, LP_tile)   final PyTorch layout tile
    # carry_ref: (block_h, LP_tile) f32  persists across the innermost L grid axis
    if has_skip:
        skip_ref, o_ref, carry_ref = rest
    else:
        o_ref, carry_ref = rest

    li = pl.program_id(2)
    lp_tile = l_tile * pool

    @pl.when(li == 0)
    def _():
        carry_ref[...] = jnp.zeros_like(carry_ref)

    prev = carry_ref[...]                                    # (block_h, LP_tile) f32

    # One fused MXU matmul for all pool sub-positions (f32 accumulation).
    y = jnp.dot(w_ref[0], x_ref[0], preferred_element_type=jnp.float32)  # (pool*block_h, L_tile)
    y = y + b_ref[0].astype(jnp.float32)                     # bias folded once, pre-scatter

    # Interleave '(h s) l -> h (l s)' + causal shift, bounded to this L tile:
    #   P[h, ((c+1) % L_tile)*pool + s] = y[s*block_h + h, c]
    # Column c = L_tile-1 wraps into lanes [0, pool): those are exactly the NEXT
    # tile's output-group-0 values -> stored into carry_ref; the CURRENT tile's
    # group 0 comes from `prev` (zero at li==0, matching F.pad).
    row = jax.lax.broadcasted_iota(jnp.int32, (l_tile, lp_tile), 0)
    col = jax.lax.broadcasted_iota(jnp.int32, (l_tile, lp_tile), 1)
    base = jnp.where(row == l_tile - 1, 0, (row + 1) * pool)  # hoisted; only +s varies

    p = jnp.zeros((block_h, lp_tile), jnp.float32)
    for s in range(pool):                                     # static unroll, pool is small
        y_s = y[s * block_h:(s + 1) * block_h, :]             # (block_h, L_tile)
        scat = (col == base + s).astype(jnp.float32)          # (L_tile, LP_tile) 0/1
        p = p + jnp.dot(y_s, scat, preferred_element_type=jnp.float32)

    carry_ref[...] = p                                        # only lanes [0,pool) are reused

    lane = jax.lax.broadcasted_iota(jnp.int32, (block_h, lp_tile), 1)
    acc = jnp.where(lane < pool, prev, p)                     # splice carried group 0
    if has_skip:
        acc = acc + skip_ref[0].astype(jnp.float32)           # fused skip-add
    o_ref[0] = acc.astype(o_ref.dtype)


def up_pool_forward(x, w, b, skip=None, *, pool=4, block_h=None, l_tile=None,
                    alias_skip=False, out_dtype=None):
    """UpPool forward.

    x:    [B, H, L]   (H = d_input), transposed=True layout (may be f32 or bf16)
    w:    [N, H]      Conv1d(k=1) weight with the kernel dim squeezed, N = d_output*pool
    b:    [N]
    skip: [B, d_output, L*pool] or None
    Returns ([B, d_output, L*pool], None), matching the PyTorch module.
    """
    B, H, L = x.shape
    N, H2 = w.shape
    assert H2 == H and N % pool == 0
    d_output = N // pool
    LP = L * pool

    if block_h is None:
        block_h = 128 if (d_output % 128 == 0 and d_output > 128) else min(d_output, 128)
    assert d_output % block_h == 0
    n_ht = d_output // block_h

    if l_tile is None:
        l_tile = min(L, 128)
    assert L % l_tile == 0
    n_lt = L // l_tile
    lp_tile = l_tile * pool

    if out_dtype is None:
        out_dtype = jnp.result_type(x.dtype, skip.dtype) if skip is not None else x.dtype

    # One-time weight/bias re-layout (tiny tensors): group rows s-major inside each
    # h-tile so the kernel issues a single (pool*block_h, H) @ (H, L_tile) MXU call.
    #   w4[hi, s*block_h + j, :] = w[(hi*block_h + j)*pool + s, :]
    w4 = (w.reshape(n_ht, block_h, pool, H).transpose(0, 2, 1, 3)
            .reshape(n_ht, pool * block_h, H)).astype(x.dtype)
    b4 = (b.astype(jnp.float32).reshape(n_ht, block_h, pool).transpose(0, 2, 1)
            .reshape(n_ht, pool * block_h, 1))

    has_skip = skip is not None
    kernel = partial(_up_pool_kernel, pool=pool, block_h=block_h, l_tile=l_tile,
                     has_skip=has_skip)

    in_specs = [
        pl.BlockSpec((1, H, l_tile), lambda bi, hi, li: (bi, 0, li)),            # x
        pl.BlockSpec((1, pool * block_h, H), lambda bi, hi, li: (hi, 0, 0)),     # w4
        pl.BlockSpec((1, pool * block_h, 1), lambda bi, hi, li: (hi, 0, 0)),     # b4
    ]
    args = [x, w4, b4]
    if has_skip:
        in_specs.append(pl.BlockSpec((1, block_h, lp_tile),
                                     lambda bi, hi, li: (bi, hi, li)))           # skip
        args.append(skip)

    io_alias = {}
    if (has_skip and alias_skip and skip.dtype == out_dtype
            and skip.shape == (B, d_output, LP)):
        io_alias = {3: 0}  # write the result in place over skip (no extra HBM output buffer)

    out = pl.pallas_call(
        kernel,
        out_shape=jax.ShapeDtypeStruct((B, d_output, LP), out_dtype),
        grid=(B, n_ht, n_lt),
        in_specs=in_specs,
        out_specs=pl.BlockSpec((1, block_h, lp_tile), lambda bi, hi, li: (bi, hi, li)),
        scratch_shapes=[pltpu.VMEM((block_h, lp_tile), jnp.float32)],
        input_output_aliases=io_alias,
        compiler_params=pltpu.CompilerParams(
            dimension_semantics=("parallel", "parallel", "arbitrary")),
    )(*args)
    return out, None


def up_pool_reference(x, w, b, skip, *, pool=4):
    """Pure-JAX reference mirroring the PyTorch forward exactly (f32 math)."""
    B, H, L = x.shape
    N = w.shape[0]
    d_output = N // pool
    y = jnp.einsum('bhl,nh->bnl', x.astype(jnp.float32), w.astype(jnp.float32))
    y = y + b.astype(jnp.float32)[None, :, None]                       # Conv1d k=1
    y = jnp.pad(y[..., :-1], ((0, 0), (0, 0), (1, 0)))                 # causal shift
    y = y.reshape(B, d_output, pool, L).transpose(0, 1, 3, 2).reshape(B, d_output, L * pool)
    if skip is not None:
        y = y + skip.astype(jnp.float32)
    return y


if __name__ == "__main__":
    # UpPool(d_input=64, expand=2, pool=4, transposed=True)
    d_input, expand, pool = 64, 2, 4
    d_output = d_input // expand      # 32
    N = d_output * pool               # 128
    B, L = 2, 384                     # L_tile = 128 -> 3 L-tiles (exercises the carry)

    key = jax.random.PRNGKey(0)
    kx, ks, kw, kb = jax.random.split(key, 4)

    x = jax.random.normal(kx, (B, d_input, L), dtype=jnp.float32)             # [B, H, L]
    skip = jax.random.normal(ks, (B, d_output, L * pool), dtype=jnp.float32)
    w = jax.random.normal(kw, (N, d_input), dtype=jnp.float32) / np.sqrt(d_input)
    b = jax.random.normal(kb, (N,), dtype=jnp.float32) * 0.1

    # 1) f32 path with skip (tight check).
    out, state = up_pool_forward(x, w, b, skip, pool=pool)
    out = jax.block_until_ready(out)
    ref = up_pool_reference(x, w, b, skip, pool=pool)
    np.testing.assert_allclose(np.asarray(out), np.asarray(ref), rtol=1e-4, atol=1e-4)
    assert out.shape == (B, d_output, L * pool)
    assert state is None

    # 2) skip=None path.
    out2, _ = up_pool_forward(x, w, b, None, pool=pool)
    out2 = jax.block_until_ready(out2)
    ref2 = up_pool_reference(x, w, b, None, pool=pool)
    np.testing.assert_allclose(np.asarray(out2), np.asarray(ref2), rtol=1e-4, atol=1e-4)

    # 3) bf16 IO path (halves HBM traffic on v6e/v7x) with in-place skip aliasing.
    x_bf = x.astype(jnp.bfloat16)
    w_bf = w.astype(jnp.bfloat16)
    skip_bf = skip.astype(jnp.bfloat16)
    ref3 = up_pool_reference(x_bf, w_bf, b, skip_bf, pool=pool)   # computed before aliasing
    out3, _ = up_pool_forward(x_bf, w_bf, b, skip_bf, pool=pool, alias_skip=True)
    out3 = jax.block_until_ready(out3)
    np.testing.assert_allclose(np.asarray(out3).astype(np.float32), np.asarray(ref3),
                               rtol=5e-2, atol=1e-1)

    print("KERNEL_OK")
</pallas_src>

<mosaic_0001>
module attributes {stable_mosaic.version = 11 : i64} {
  func.func @_up_pool_kernel(%arg0: i32, %arg1: i32, %arg2: i32, %arg3: memref<1x64x128xf32, #tpu.memory_space<vmem>>, %arg4: memref<1x128x64xf32, #tpu.memory_space<vmem>>, %arg5: memref<1x128x1xf32, #tpu.memory_space<vmem>>, %arg6: memref<1x32x512xf32, #tpu.memory_space<vmem>>, %arg7: memref<1x32x512xf32, #tpu.memory_space<vmem>>, %arg8: memref<32x512xf32, #tpu.memory_space<vmem>>) attributes {dimension_semantics = [#tpu.dimension_semantics<parallel>, #tpu.dimension_semantics<parallel>, #tpu.dimension_semantics<arbitrary>], iteration_bounds = array<i64: 2, 1, 3>, scalar_prefetch = 0 : i64, scratch_operands = 1 : i64, tpu.core_type = #tpu.core_type<tc>, window_params = [{transform_indices = @transform_0, window_bounds = array<i64: 1, 64, 128>}, {transform_indices = @transform_1, window_bounds = array<i64: 1, 128, 64>}, {transform_indices = @transform_2, window_bounds = array<i64: 1, 128, 1>}, {transform_indices = @transform_3, window_bounds = array<i64: 1, 32, 512>}, {transform_indices = @transform_4, window_bounds = array<i64: 1, 32, 512>}]} {
    %c0_i32 = arith.constant 0 : i32
    %0 = arith.cmpi eq, %arg2, %c0_i32 : i32
    %1 = arith.extui %0 : i1 to i32
    %c0_i32_0 = arith.constant 0 : i32
    %2 = arith.cmpi ne, %1, %c0_i32_0 : i32
    scf.if %2 {
      %cst_28 = arith.constant 0.000000e+00 : f32
      %67 = vector.broadcast %cst_28 : f32 to vector<32x512xf32>
      %c0_29 = arith.constant 0 : index
      %c0_30 = arith.constant 0 : index
      %68 = vector.load %arg8[%c0_29, %c0_30] : memref<32x512xf32, #tpu.memory_space<vmem>>, vector<32x512xf32>
      tpu.vector_store %arg8[%c0_29, %c0_30], %67 {strides = array<i32>} : memref<32x512xf32, #tpu.memory_space<vmem>>, vector<32x512xf32>,
    } else {
    }
    %c0 = arith.constant 0 : index
    %c0_1 = arith.constant 0 : index
    %3 = vector.load %arg8[%c0, %c0_1] : memref<32x512xf32, #tpu.memory_space<vmem>>, vector<32x512xf32>
    %c0_2 = arith.constant 0 : index
    %c0_3 = arith.constant 0 : index
    %c0_4 = arith.constant 0 : index
    %4 = vector.load %arg4[%c0_2, %c0_3, %c0_4] : memref<1x128x64xf32, #tpu.memory_space<vmem>>, vector<1x128x64xf32>
    %5 = vector.shape_cast %4 : vector<1x128x64xf32> to vector<128x64xf32>
    %c0_5 = arith.constant 0 : index
    %c0_6 = arith.constant 0 : index
    %c0_7 = arith.constant 0 : index
    %6 = vector.load %arg3[%c0_5, %c0_6, %c0_7] : memref<1x64x128xf32, #tpu.memory_space<vmem>>, vector<1x64x128xf32>
    %7 = vector.shape_cast %6 : vector<1x64x128xf32> to vector<64x128xf32>
    %cst = arith.constant dense<0.000000e+00> : vector<128x128xf32>
    %8 = tpu.matmul %5, %7, %cst {dimension_numbers = #tpu.dot_dimension_numbers<[1], [0], [0], [1], [0, 0, 1, 1], [], []>} : vector<128x64xf32>, vector<64x128xf32>, vector<128x128xf32> -> vector<128x128xf32>
    %c0_8 = arith.constant 0 : index
    %c0_9 = arith.constant 0 : index
    %c0_10 = arith.constant 0 : index
    %9 = vector.load %arg5[%c0_8, %c0_9, %c0_10] : memref<1x128x1xf32, #tpu.memory_space<vmem>>, vector<1x128x1xf32>
    %10 = vector.shape_cast %9 : vector<1x128x1xf32> to vector<128x1xf32>
    %11 = vector.broadcast %10 : vector<128x1xf32> to vector<128x128xf32>
    %12 = arith.addf %8, %11 : vector<128x128xf32>
    %13 = tpu.iota {dimensions = array<i32: 0>} : vector<128x512xi32>
    %14 = tpu.iota {dimensions = array<i32: 1>} : vector<128x512xi32>
    %c127_i32 = arith.constant 127 : i32
    %15 = vector.broadcast %c127_i32 : i32 to vector<128x512xi32>
    %16 = arith.cmpi eq, %13, %15 : vector<128x512xi32>
    %c1_i32 = arith.constant 1 : i32
    %17 = vector.broadcast %c1_i32 : i32 to vector<128x512xi32>
    %18 = arith.addi %13, %17 : vector<128x512xi32>
    %c4_i32 = arith.constant 4 : i32
    %19 = vector.broadcast %c4_i32 : i32 to vector<128x512xi32>
    %20 = arith.muli %18, %19 : vector<128x512xi32>
    %c0_i32_11 = arith.constant 0 : i32
    %21 = vector.broadcast %c0_i32_11 : i32 to vector<128x512xi32>
    %22 = arith.select %16, %21, %20 : vector<128x512xi1>, vector<128x512xi32>
    %cst_12 = arith.constant 0.000000e+00 : f32
    %23 = vector.broadcast %cst_12 : f32 to vector<32x512xf32>
    %24 = vector.extract_strided_slice %12 {offsets = [0, 0], sizes = [32, 128], strides = [1, 1]} : vector<128x128xf32> to vector<32x128xf32>
    %c0_i32_13 = arith.constant 0 : i32
    %25 = vector.broadcast %c0_i32_13 : i32 to vector<128x512xi32>
    %26 = arith.addi %22, %25 : vector<128x512xi32>
    %27 = arith.cmpi eq, %14, %26 : vector<128x512xi32>
    %28 = arith.extui %27 : vector<128x512xi1> to vector<128x512xi32>
    %29 = arith.sitofp %28 : vector<128x512xi32> to vector<128x512xf32>
    %cst_14 = arith.constant dense<0.000000e+00> : vector<32x512xf32>
    %30 = tpu.matmul %24, %29, %cst_14 {dimension_numbers = #tpu.dot_dimension_numbers<[1], [0], [0], [1], [0, 0, 1, 1], [], []>} : vector<32x128xf32>, vector<128x512xf32>, vector<32x512xf32> -> vector<32x512xf32>
    %31 = arith.addf %23, %30 : vector<32x512xf32>
    %32 = vector.extract_strided_slice %12 {offsets = [32, 0], sizes = [32, 128], strides = [1, 1]} : vector<128x128xf32> to vector<32x128xf32>
    %c1_i32_15 = arith.constant 1 : i32
    %33 = vector.broadcast %c1_i32_15 : i32 to vector<128x512xi32>
    %34 = arith.addi %22, %33 : vector<128x512xi32>
    %35 = arith.cmpi eq, %14, %34 : vector<128x512xi32>
    %36 = arith.extui %35 : vector<128x512xi1> to vector<128x512xi32>
    %37 = arith.sitofp %36 : vector<128x512xi32> to vector<128x512xf32>
    %cst_16 = arith.constant dense<0.000000e+00> : vector<32x512xf32>
    %38 = tpu.matmul %32, %37, %cst_16 {dimension_numbers = #tpu.dot_dimension_numbers<[1], [0], [0], [1], [0, 0, 1, 1], [], []>} : vector<32x128xf32>, vector<128x512xf32>, vector<32x512xf32> -> vector<32x512xf32>
    %39 = arith.addf %31, %38 : vector<32x512xf32>
    %40 = vector.extract_strided_slice %12 {offsets = [64, 0], sizes = [32, 128], strides = [1, 1]} : vector<128x128xf32> to vector<32x128xf32>
    %c2_i32 = arith.constant 2 : i32
    %41 = vector.broadcast %c2_i32 : i32 to vector<128x512xi32>
    %42 = arith.addi %22, %41 : vector<128x512xi32>
    %43 = arith.cmpi eq, %14, %42 : vector<128x512xi32>
    %44 = arith.extui %43 : vector<128x512xi1> to vector<128x512xi32>
    %45 = arith.sitofp %44 : vector<128x512xi32> to vector<128x512xf32>
    %cst_17 = arith.constant dense<0.000000e+00> : vector<32x512xf32>
    %46 = tpu.matmul %40, %45, %cst_17 {dimension_numbers = #tpu.dot_dimension_numbers<[1], [0], [0], [1], [0, 0, 1, 1], [], []>} : vector<32x128xf32>, vector<128x512xf32>, vector<32x512xf32> -> vector<32x512xf32>
    %47 = arith.addf %39, %46 : vector<32x512xf32>
    %48 = vector.extract_strided_slice %12 {offsets = [96, 0], sizes = [32, 128], strides = [1, 1]} : vector<128x128xf32> to vector<32x128xf32>
    %c3_i32 = arith.constant 3 : i32
    %49 = vector.broadcast %c3_i32 : i32 to vector<128x512xi32>
    %50 = arith.addi %22, %49 : vector<128x512xi32>
    %51 = arith.cmpi eq, %14, %50 : vector<128x512xi32>
    %52 = arith.extui %51 : vector<128x512xi1> to vector<128x512xi32>
    %53 = arith.sitofp %52 : vector<128x512xi32> to vector<128x512xf32>
    %cst_18 = arith.constant dense<0.000000e+00> : vector<32x512xf32>
    %54 = tpu.matmul %48, %53, %cst_18 {dimension_numbers = #tpu.dot_dimension_numbers<[1], [0], [0], [1], [0, 0, 1, 1], [], []>} : vector<32x128xf32>, vector<128x512xf32>, vector<32x512xf32> -> vector<32x512xf32>
    %55 = arith.addf %47, %54 : vector<32x512xf32>
    %c0_19 = arith.constant 0 : index
    %c0_20 = arith.constant 0 : index
    %56 = vector.load %arg8[%c0_19, %c0_20] : memref<32x512xf32, #tpu.memory_space<vmem>>, vector<32x512xf32>
    tpu.vector_store %arg8[%c0_19, %c0_20], %55 {strides = array<i32>} : memref<32x512xf32, #tpu.memory_space<vmem>>, vector<32x512xf32>,
    %57 = tpu.iota {dimensions = array<i32: 1>} : vector<32x512xi32>
    %c4_i32_21 = arith.constant 4 : i32
    %58 = vector.broadcast %c4_i32_21 : i32 to vector<32x512xi32>
    %59 = arith.cmpi slt, %57, %58 : vector<32x512xi32>
    %60 = arith.select %59, %3, %55 : vector<32x512xi1>, vector<32x512xf32>
    %c0_22 = arith.constant 0 : index
    %c0_23 = arith.constant 0 : index
    %c0_24 = arith.constant 0 : index
    %61 = vector.load %arg6[%c0_22, %c0_23, %c0_24] : memref<1x32x512xf32, #tpu.memory_space<vmem>>, vector<1x32x512xf32>
    %62 = vector.shape_cast %61 : vector<1x32x512xf32> to vector<32x512xf32>
    %63 = arith.addf %60, %62 : vector<32x512xf32>
    %c0_25 = arith.constant 0 : index
    %c0_26 = arith.constant 0 : index
    %c0_27 = arith.constant 0 : index
    %64 = vector.load %arg7[%c0_25, %c0_26, %c0_27] : memref<1x32x512xf32, #tpu.memory_space<vmem>>, vector<1x32x512xf32>
    %65 = vector.shape_cast %64 : vector<1x32x512xf32> to vector<32x512xf32>
    %66 = vector.shape_cast %63 : vector<32x512xf32> to vector<1x32x512xf32>
    tpu.vector_store %arg7[%c0_25, %c0_26, %c0_27], %66 {strides = array<i32>} : memref<1x32x512xf32, #tpu.memory_space<vmem>>, vector<1x32x512xf32>,
    return
  }
  func.func @transform_0(%arg0: i32, %arg1: i32, %arg2: i32) -> (i32, i32, i32) {
    %c0_i32 = arith.constant 0 : i32
    %c0_i32_0 = arith.constant 0 : i32
    return %arg0, %c0_i32, %arg2 : i32, i32, i32
  }
  func.func @transform_1(%arg0: i32, %arg1: i32, %arg2: i32) -> (i32, i32, i32) {
    %c0_i32 = arith.constant 0 : i32
    %c0_i32_0 = arith.constant 0 : i32
    %c0_i32_1 = arith.constant 0 : i32
    return %arg1, %c0_i32, %c0_i32_0 : i32, i32, i32
  }
  func.func @transform_2(%arg0: i32, %arg1: i32, %arg2: i32) -> (i32, i32, i32) {
    %c0_i32 = arith.constant 0 : i32
    %c0_i32_0 = arith.constant 0 : i32
    %c0_i32_1 = arith.constant 0 : i32
    return %arg1, %c0_i32, %c0_i32_0 : i32, i32, i32
  }
  func.func @transform_3(%arg0: i32, %arg1: i32, %arg2: i32) -> (i32, i32, i32) {
    %c0_i32 = arith.constant 0 : i32
    return %arg0, %arg1, %arg2 : i32, i32, i32
  }
  func.func @transform_4(%arg0: i32, %arg1: i32, %arg2: i32) -> (i32, i32, i32) {
    %c0_i32 = arith.constant 0 : i32
    return %arg0, %arg1, %arg2 : i32, i32, i32
  }
}

</mosaic_0001>

<bundles_post_ra>
// kernel: tpu_custom_call.1
= control target key start
LH: loop header
LB: loop body
LE: loop exit
PB: predicated region body
PF: predicated region fallthrough
CT: control target
= control target key end

     0   :  { %s4616_s0 = inlined_call_operand.hbm [shape: f32[2,64,384], index: 0, kind: input, shape index: {}]   ;;  %s4617_s1 = inlined_call_operand.vmem [shape: f32[1,128,64], index: 1, kind: input, shape index: {}]   ;;  %s4618_s2 = inlined_call_operand.vmem [shape: f32[1,128,1], index: 2, kind: input, shape index: {}]   ;;  %s4619_s3 = inlined_call_operand.hbm [shape: f32[2,32,1536], index: 3, kind: input, shape index: {}]   ;;  %s4620_s4 = inlined_call_operand.hbm [shape: f32[2,32,1536], index: 4, kind: output, shape index: {}]  }
   0x1   :  { %4626 = sst [smem:[#allocation18_spill]] %s4616_s0 }
   0x2   :  { %9 = vsyncpa [#allocation4], 0 }
   0x3   :  { %11 = vsyncpa [#allocation4 + $0x1], 0 }
   0x4   :  { %12 = vsyncpa [#allocation7], 0 }
   0x5   :  { %14 = vsyncpa [#allocation7 + $0x1], 0 }
   0x6   :  { %15 = vsyncpa [#allocation5], 0 }
   0x7   :  { %17 = vsyncpa [#allocation5 + $0x1], 0  ;;  %s3115_s15 = smov 0   ;;  %s3117_s16 = smov 0  }
   0x8   :  { %s3119_s17 = smov 0   ;;  %s3121_s18 = smov 0  }
   0x9   :  { %s3123_s19 = smov 0   ;;  %s3125_s20 = smov 0  }
   0xa   :  { %s3127_s21 = smov 0   ;;  %s3129_s22 = smov 0  }
   0xb LB: > { %4627 = sst [smem:[#allocation12_spill]] %s3048_s15  ;;  %s2264_s23 = sadd.s32 4294967295, %s3076_s22   ;;  %s3076_s22 = sphi %s3129_s22, %s23_s22   ;;  %s3072_s21 = sphi %s3127_s21, %s4651_s21   ;;  %s3068_s20 = sphi %s3125_s20, %s4650_s20   ;;  %s3064_s19 = sphi %s3123_s19, %s4649_s19   ;;  %s3060_s18 = sphi %s3121_s18, %s4648_s18   ;;  %s3056_s17 = sphi %s3119_s17, %s4643_s17   ;;  %s3052_s16 = sphi %s3117_s16, %s4647_s16   ;;  %s3048_s15 = sphi %s3115_s15, %s4646_s15  }
   0xc   : > { %4628 = sst [smem:[#allocation13_spill]] %s3056_s17  ;;  %s2265_s24 = sadd.s32 4294967294, %s3076_s22  }
   0xd   : > { %s35_s25 = sadd.s32 1, %s3068_s20  ;;  %s42_s26 = sadd.s32 1, %s3072_s21 }
   0xe   : > { %p36_p0 = scmp.ge.s32.totalorder %s35_s25, 3  ;;  %s51_s27 = sadd.s32 1, %s3056_s17 }
   0xf   : > { %p58_p1 = scmp.ne.s32.totalorder %s3056_s17, %s3052_s16  ;;  %p59_p2 = scmp.eq.s32.totalorder %s3076_s22, 0 }
  0x10   : > { %s4653_s25 = smov (%p36_p0, %s35_s25), 0  ;;  %s4655_s26 = smov (!%p36_p0, %s42_s26), %s3072_s21 }
  0x11   : > { %4629 = sst [smem:[#allocation14_spill]] %s4653_s25  ;;  %s47_s28 = ssub.s32 %s3068_s20, %s4653_s25 }
  0x12   : > { %p3168_p3 = por %p59_p2, %p58_p1  ;;  %p44_p4 = scmp.ge.s32.totalorder %s4655_s26, 2 }
  0x13   : > { %p64_p5 = scmp.ne.s32.totalorder %s3052_s16, %s3048_s15  ;;  %p65_p6 = scmp.eq.s32.totalorder %s2264_s23, 0 }
  0x14   : > { %p174_p7 = scmp.eq.s32.totalorder %s2264_s23, 5  ;;  %s4657_s26 = smov (%p44_p4, %s4655_s26), 0 }
  0x15   : > { %4631 = sst [smem:[#allocation15_spill]] %s4657_s26  ;;  %p3176_p8 = por %p65_p6, %p64_p5 }
  0x16   : > { %p3180_p9 = por %p174_p7, %p58_p1  ;;  %s46_s6 = ssub.s32 %s3072_s21, %s4657_s26 }
  0x17   : > { %p180_p10 = scmp.eq.s32.totalorder %s2265_s24, 5  ;;  %s48_s7 = sor.u32 %s47_s28, %s46_s6 }
  0x18   : > { %p49_p11 = scmp.eq.s32.totalorder %s48_s7, 0  ;;  %p2833_p13 = scmp.lt.s32.totalorder %s3076_s22, 6 }
  0x19   : > { %p3186_p12 = por %p180_p10, %p64_p5  ;;  %s3192_s9 = sand.u32 1, %s3056_s17  }
  0x1a   : > { %s3195_s10 = scalar_select %p49_p11, %s3056_s17, %s51_s27  }
  0x1b   : > { %s4634_s8 = scalar_select %p3186_p12, 1, 0 }
  0x1c   : > { %4636 = sst [smem:[#allocation17_spill]] %s3195_s10  ;;  %s2270_s11 = sshll.u32 %s3192_s9, 6 }
  0x1d   : > { %4635 = sst [smem:[#allocation16_spill]] %s4634_s8  ;;  %s2813_s12 = smul.u32 24, %s3072_s21 }
  0x1e   : > { %s220_s13 = scalar_lea.vmem [#allocation3], %s2270_s11  ;;  %p3201_p0 = pnand %p2833_p13, %p3168_p3 }
  0x1f   : > { %s229_s14 = sshll.u32 %s220_s13, 4  ;;  %s224_s24 = sadd.s32 %s3068_s20, %s2813_s12  ;;  %s230_s14 = int_to_ptr.vmem [resolvable:$true] %s229_s14 }
  0x20   : > { %s2271_s28 = sshll.u32 %s224_s24, 3  ;;  %s4638_s0 = sld [smem:[#allocation18_spill]] }
  0x21   : > { %s217_s11 = scalar_lea.sflag [#allocation4], %s3192_s9  ;;  %s3078_s25 = smov 384  }
  0x22   : > { %s3079_s13 = smov 128   ;;  %s3080_s29 = smov 8  }
  0x23   : > { %p2275_p1 = scmp.ge.s32.totalorder %s3076_s22, 1  ;;  %p264_p2 = scmp.lt.s32.totalorder %s3076_s22, 7 }
  0x24   : > { %s2272_s10 = sshll.u32 %s3192_s9, 7  ;;  %s2273_s24 = sshll.u32 %s3068_s20, 2 }
  0x25   : > { %p3215_p3 = pnand %p2275_p1, %p264_p2  ;;  %s2814_s27 = smul.u32 48, %s3072_s21 }
  0x26   : > { %s226_s7 = scalar_lea.hbm %s4638_s0, %s2271_s28  ;;  %s243_s28 = scalar_lea.vmem [#allocation6], %s2272_s10 }
  0x27   : > { %s227_s26 = sshll.u32 %s226_s7, 4  ;;  %s256_s6 = sshll.u32 %s243_s28, 4  ;;  %s228_s26 = int_to_ptr.hbm [resolvable:$true] %s227_s26  ;;  %s257_s6 = int_to_ptr.vmem [resolvable:$true] %s256_s6 }
  0x28   : > { %2825 = dma.hbm_to_vmem [thread:$0]  (!%p3201_p0), %s228_s26, 1024, %s230_s14, %s217_s11, %s3078_s25, %s3079_s13, %s3080_s29  }
  0x29   : > { %s251_s7 = sadd.s32 %s2814_s27, %s2273_s24  ;;  %s240_s26 = scalar_lea.sflag [#allocation7], %s3192_s9 }
  0x2a   : > { %s2274_s0 = sshll.u32 %s251_s7, 3  ;;  %s3081_s14 = smov 1536  }
  0x2b   : > { %s253_s15 = scalar_lea.hbm %s4619_s3, %s2274_s0  ;;  %s3082_s11 = smov 512  }
  0x2c   : > { %s254_s25 = sshll.u32 %s253_s15, 4  ;;  %s3083_s13 = smov 32   ;;  %s255_s25 = int_to_ptr.hbm [resolvable:$true] %s254_s25 }
  0x2d   : > { %2828 = dma.hbm_to_vmem [thread:$0]  (!%p3201_p0), %s255_s25, 2048, %s257_s6, %s240_s26, %s3081_s14, %s3082_s11, %s3083_s13  }
  0x2e   : > { %268 = sbr.rel (%p3215_p3) target bundleno = 538 (0x21a), region = 36  ;;  %s3230_s10 = sand.u32 (!%p3215_p3), 1, %s3052_s16  }
  0x2f   : > { %s2276_s29 = sshll.u32 (!%p3215_p3), %s3230_s10, 6  ;;  %s271_s17 = scalar_lea.sflag (!%p3215_p3), [#allocation4], %s3230_s10 }
  0x30   : > { %s3234_s0 = scalar_lea.vmem (!%p3215_p3), [#allocation3], %s2276_s29 }
  0x33   : > { %3035 = dma.done.wait (%p3176_p8), %s271_s17, 1024  }
  0x34   : > { %3037 = vsyncadd (%p3176_p8), %s271_s17, 4294966272  ;;  %s2277_s15 = sshll.u32 %s3230_s10, 7  ;;  %s281_s8 = scalar_lea.sflag [#allocation7], %s3230_s10 }
  0x35   : > { %s3242_s9 = scalar_lea.vmem [#allocation6], %s2277_s15 }
  0x36   : > { %3039 = dma.done.wait (%p3176_p8), %s281_s8, 2048  }
  0x37   : > { %3041 = vsyncadd (%p3176_p8), %s281_s8, 4294965248  ;;  %s3248_s23 = scalar_lea.vmem [#allocation8], %s2277_s15  ;;  %p2279_p4 = scmp.ne.s32.totalorder %s3060_s18, 0 }
  0x39   : > { %342 = sbr.rel (%p2279_p4) target bundleno = 67 (0x43), region = 48 }
  0x3e   : > { %v3084_v0 = vmov 0.0  }
  0x3f   : > { %343 = vst [vmem:[#allocation2 + $0x30] sm:$0xff] %v3084_v0 }
  0x40   : > { %347 = vst [vmem:[#allocation2 + $0x50] sm:$0xff] %v3084_v0 }
  0x41   : > { %351 = vst [vmem:[#allocation2 + $0x40] sm:$0xff] %v3084_v0 }
  0x42   : > { %355 = vst [vmem:[#allocation2 + $0x60] sm:$0xff] %v3084_v0 }
  0x43 PF: > { %v398_v1 = vld [vmem:[%s3234_s0 + $0x38] sm:$0xff]  ;;  %v397_v2 = vld [vmem:[%s3234_s0 + $0x30] sm:$0xff]  ;;  %v3085_v3 = vmov 0   ;;  %v396_v4 = vld [vmem:[%s3234_s0 + $0x28] sm:$0xff]  ;;  %vm495_vm0 = vcmask 523264   ;;  %v609_v37 = vlaneseq  ;;  %v3086_v56 = vmov 1.0  }
  0x44   : > { %552 = vmatpush.msra.mxu0 %v398_v1  ;;  %2911 = vset.pattern.permute.xlu0 %v3085_v3  ;;  %v403_v5 = vld [vmem:[%s4618_s2 + $0x20] sm:$0xff]  ;;  %v405_v7 = vld [vmem:[%s4618_s2 + $0x30] sm:$0xff]  ;;  %v394_v8 = vld [vmem:[%s3234_s0 + $0x18] sm:$0xff]  ;;  %s2815_s17 = smul.u32 48, %s3064_s19  ;;  %s2109_s12 = sshll.u32 %s3248_s23, 4  ;;  %s2110_s12 = int_to_ptr.vmem [resolvable:$true] %s2109_s12 }
  0x45   : > { %2912 = vset.pattern.permute.xlu1 %v3085_v3  ;;  %2913 = vset.pattern.permute.xlu2 %v3085_v3  ;;  %v395_v6 = vld [vmem:[%s3234_s0 + $0x20] sm:$0xff]  ;;  %v393_v9 = vld [vmem:[%s3234_s0 + $0x10] sm:$0xff]  ;;  %v404_v10 = vld [vmem:[%s4618_s2 + $0x28] sm:$0xff]  ;;  %v3354_v39 = vshrl.u32 %v609_v37, 7  ;;  %v3359_v44 = vand.u32 127, %v609_v37  ;;  %s2092_s27 = scalar_lea.sflag [#allocation5], %s3230_s10 }
  0x46   : > { %553 = vmatpush.msra.mxu0 %v397_v2  ;;  %437 = vperm.xlu0 %2911, %v403_v5   ;;  %v392_v11 = vld [vmem:[%s3234_s0 + $0x8] sm:$0xff]  ;;  %v406_v12 = vld [vmem:[%s4618_s2 + $0x38] sm:$0xff]  ;;  %v391_v13 = vld [vmem:[%s3234_s0] sm:$0xff]  ;;  %s2809_s0 = sshll.u32 %s3060_s18, 2  ;;  %s2994_s26 = scalar_lea.hbm %s4620_s4, 768 }
  0x47   : > { %447 = vperm.xlu1 %2912, %v405_v7   ;;  %v375_v14 = vld [vmem:[%s4617_s1] sm:$0xff]  ;;  %v401_v16 = vld [vmem:[%s4618_s2 + $0x10] sm:$0xff]  ;;  %v402_v17 = vld [vmem:[%s4618_s2 + $0x18] sm:$0xff]  ;;  %v625_v40 = vadd.s32 120, %v3354_v39  ;;  %v624_v42 = vadd.s32 112, %v3354_v39  ;;  %v623_v46 = vadd.s32 104, %v3354_v39  ;;  %s2106_s15 = sadd.s32 %s2815_s17, %s2809_s0 }
  0x48   : > { %554 = vmatpush.msra.mxu0 %v396_v4  ;;  %v399_v15 = vld [vmem:[%s4618_s2] sm:$0xff]  ;;  %v376_v18 = vld [vmem:[%s4617_s1 + $0x8] sm:$0xff]  ;;  %v377_v21 = vld [vmem:[%s4617_s1 + $0x10] sm:$0xff]  ;;  %v3371_v50 = vadd.s32 128, %v3359_v44  ;;  %v3374_v51 = vadd.s32 256, %v3359_v44  ;;  %v622_v54 = vadd.s32 96, %v3354_v39 }
  0x49   : > { %417 = vperm.xlu2 %2913, %v399_v15   ;;  %v400_v19 = vld [vmem:[%s4618_s2 + $0x8] sm:$0xff]  ;;  %v409_v22 = vld [vmem:[%s4618_s2 + $0x50] sm:$0xff]  ;;  %v411_v23 = vld [vmem:[%s4618_s2 + $0x60] sm:$0xff]  ;;  %v662_v41 = vadd.s32 1, %v625_v40  ;;  %vm646_vm1 = vcmp.eq.s32.totalorder %v625_v40, 127  ;;  %v661_v45 = vadd.s32 1, %v624_v42 }
  0x4a   : > { %555 = vmatpush.msra.mxu0 %v395_v6  ;;  %v408_v20 = vld [vmem:[%s4618_s2 + $0x48] sm:$0xff]  ;;  %v378_v24 = vld [vmem:[%s4617_s1 + $0x18] sm:$0xff]  ;;  %v379_v27 = vld [vmem:[%s4617_s1 + $0x20] sm:$0xff]  ;;  %v660_v53 = vadd.s32 1, %v623_v46  ;;  %v621_v55 = vadd.s32 88, %v3354_v39  ;;  %v659_v59 = vadd.s32 1, %v622_v54 }
  0x4b   : > { %v412_v25 = vld [vmem:[%s4618_s2 + $0x68] sm:$0xff]  ;;  %v414_v26 = vld [vmem:[%s4618_s2 + $0x78] sm:$0xff]  ;;  %v381_v29 = vld [vmem:[%s4617_s1 + $0x30] sm:$0xff]  ;;  %v678_v43 = vmul.u32 4, %v662_v41  ;;  %v3376_v52 = vmul.u32 4, %v661_v45  ;;  %v620_v61 = vadd.s32 80, %v3354_v39 }
  0x4c   : > { %556 = vmatpush.msra.mxu0 %v394_v8  ;;  %v380_v28 = vld [vmem:[%s4617_s1 + $0x28] sm:$0xff]  ;;  %v407_v30 = vld [vmem:[%s4618_s2 + $0x40] sm:$0xff]  ;;  %v382_v31 = vld [vmem:[%s4617_s1 + $0x38] sm:$0xff]  ;;  %v3392_v58 = vmul.u32 4, %v660_v53  ;;  %v658_v60 = vadd.s32 1, %v621_v55  ;;  %v3407_v63 = vmul.u32 4, %v659_v59 }
  0x4d   : > { %v410_v32 = vld [vmem:[%s4618_s2 + $0x58] sm:$0xff]  ;;  %v383_v33 = vld [vmem:[%s4617_s1 + $0x40] sm:$0xff]  ;;  %v413_v34 = vld [vmem:[%s4618_s2 + $0x70] sm:$0xff]  ;;  %v3365_v48 = vsel %vm646_vm1, 0, %v678_v43  ;;  %v3390_v57 = vadd.s32 1, %v3376_v52  ;;  %v657_v1 = vadd.s32 1, %v620_v61 }
  0x4e   : > { %557 = vmatpush.msra.mxu0 %v393_v9  ;;  %442 = vperm.xlu0 %2911, %v404_v10   ;;  %v384_v35 = vld [vmem:[%s4617_s1 + $0x48] sm:$0xff]  ;;  %v385_v36 = vld [vmem:[%s4617_s1 + $0x50] sm:$0xff]  ;;  %v386_v38 = vld [vmem:[%s4617_s1 + $0x58] sm:$0xff]  ;;  %v3368_v49 = vadd.s32 1, %v3365_v48  ;;  %v3403_v62 = vadd.s32 1, %v3392_v58  ;;  %v3409_v0 = vmul.u32 4, %v658_v60 }
  0x4f   : > { %452 = vperm.xlu1 %2912, %v406_v12   ;;  %v387_v47 = vld [vmem:[%s4617_s1 + $0x60] sm:$0xff]  ;;  %vm959_vm5 = vcmp.eq.s32.totalorder %v3359_v44, %v3390_v57  ;;  %vm960_vm6 = vcmp.eq.s32.totalorder %v3371_v50, %v3390_v57  ;;  %vm961_vm7 = vcmp.eq.s32.totalorder %v3374_v51, %v3390_v57  ;;  %v619_v2 = vadd.s32 72, %v3354_v39  ;;  %v388_v3 = vld [vmem:[%s4617_s1 + $0x68] sm:$0xff]  ;;  %s2810_s18 = sshll.u32 %s2106_s15, 3 }
  0x50   : > { %558 = vmatpush.msra.mxu0 %v392_v11  ;;  %vm963_vm2 = vcmp.eq.s32.totalorder %v3359_v44, %v3368_v49  ;;  %vm964_vm3 = vcmp.eq.s32.totalorder %v3371_v50, %v3368_v49  ;;  %vm965_vm4 = vcmp.eq.s32.totalorder %v3374_v51, %v3368_v49  ;;  %vm955_vm8 = vcmp.eq.s32.totalorder %v3359_v44, %v3403_v62  ;;  %s2108_s30 = scalar_lea.hbm %s4620_s4, %s2810_s18 }
  0x51   : > { %422 = vperm.xlu2 %2913, %v400_v19   ;;  %2424 = vmatpush.msk.msra.mxu1 %vm963_vm2, %v3086_v56  ;;  %vm956_vm9 = vcmp.eq.s32.totalorder %v3371_v50, %v3403_v62  ;;  %vm957_vm10 = vcmp.eq.s32.totalorder %v3374_v51, %v3403_v62  ;;  %v3425_v4 = vadd.s32 1, %v3407_v63  ;;  %v3428_v5 = vadd.s32 1, %v3409_v0  ;;  %v389_v19 = vld [vmem:[%s4617_s1 + $0x70] sm:$0xff]  ;;  %s2111_s24 = sshll.u32 %s2108_s30, 4  ;;  %s2112_s24 = int_to_ptr.hbm [resolvable:$true] %s2111_s24 }
  0x52   : > { %559 = vmatpush.msra.mxu0 %v391_v13  ;;  %2440 = vmatpush.msk.msra.mxu2 %vm964_vm3, %v3086_v56  ;;  %v3430_v6 = vmul.u32 4, %v657_v1  ;;  %v656_v7 = vadd.s32 1, %v619_v2  ;;  %v618_v8 = vadd.s32 64, %v3354_v39  ;;  %v617_v12 = vadd.s32 56, %v3354_v39  ;;  %s2988_s28 = sshra.s32 %s2112_s24, 4  ;;  %s2989_s28 = int_to_ptr.hbm [resolvable:$true] %s2988_s28 }
  0x53   : > { %2280 = vmatmul.msk.f32.vlgmr.msra.gmra.mxu0 %vm495_vm0, %v375_v14  ;;  %2456 = vmatpush.msk.msra.mxu3 %vm965_vm4, %v3086_v56  ;;  %vm951_vm11 = vcmp.eq.s32.totalorder %v3359_v44, %v3425_v4  ;;  %vm952_vm12 = vcmp.eq.s32.totalorder %v3371_v50, %v3425_v4  ;;  %vm953_vm13 = vcmp.eq.s32.totalorder %v3374_v51, %v3425_v4  ;;  %v616_v13 = vadd.s32 48, %v3354_v39  ;;  %s2990_s6 = scalar_lea.hbm %s2989_s28, 128  ;;  %p2995_p8 = scmp.lt.s32.totalorder %s2989_s28, %s4620_s4 }
  0x54   : > { %2425 = vmatpush.msk.msra.mxu1 %vm959_vm5, %v3086_v56  ;;  %2441 = vmatpush.msk.msra.mxu2 %vm960_vm6, %v3086_v56  ;;  %vm947_vm14 = vcmp.eq.s32.totalorder %v3359_v44, %v3428_v5  ;;  %vm948_vm15 = vcmp.eq.s32.totalorder %v3371_v50, %v3428_v5  ;;  %vm949_vm1 = vcmp.eq.s32.totalorder %v3374_v51, %v3428_v5  ;;  %v3450_v9 = vadd.s32 1, %v3430_v6  ;;  %p2991_p5 = scmp.ne.s32.totalorder %s2989_s28, %s2990_s6  ;;  %p2996_p10 = scmp.lt.s32.totalorder %s2994_s26, %s2990_s6 }
  0x55   : > { %2457 = vmatpush.msk.msra.mxu3 %vm961_vm7, %v3086_v56  ;;  %v3452_v10 = vmul.u32 4, %v656_v7  ;;  %v655_v11 = vadd.s32 1, %v618_v8  ;;  %v647_v46 = vadd.s32 1, %v3354_v39  ;;  %v3614_v55 = vadd.s32 384, %v3359_v44 }
  0x56   : > { %427 = vperm.xlu0 %2911, %v401_v16   ;;  %2426 = vmatpush.msk.msra.mxu1 %vm955_vm8, %v3086_v56  ;;  %vm943_vm2 = vcmp.eq.s32.totalorder %v3359_v44, %v3450_v9  ;;  %vm944_vm3 = vcmp.eq.s32.totalorder %v3371_v50, %v3450_v9  ;;  %vm945_vm4 = vcmp.eq.s32.totalorder %v3374_v51, %v3450_v9  ;;  %v654_v16 = vadd.s32 1, %v617_v12  ;;  %p2992_p6 = pnand %p2991_p5, %p3180_p9  ;;  %p2997_p11 = por %p2996_p10, %p2995_p8 }
  0x57   : > { %432 = vperm.xlu1 %2912, %v402_v17   ;;  %2442 = vmatpush.msk.msra.mxu2 %vm956_vm9, %v3086_v56  ;;  %v3466_v14 = vadd.s32 1, %v3452_v10  ;;  %v3469_v15 = vmul.u32 4, %v655_v11  ;;  %v653_v17 = vadd.s32 1, %v616_v13  ;;  %v3698_v60 = vadd.s32 3, %v3376_v52 }
  0x58   : > { %2458 = vmatpush.msk.msra.mxu3 %vm957_vm10, %v3086_v56  ;;  %2427 = vmatpush.msk.msra.mxu1 %vm951_vm11, %v3086_v56  ;;  %v3809_v7 = vadd.s32 2, %v3376_v52  ;;  %v3822_v8 = vadd.s32 2, %v3392_v58  ;;  %v3830_v11 = vadd.s32 2, %v3407_v63  ;;  %v3839_v13 = vadd.s32 3, %v3409_v0  ;;  %p2993_p7 = pneg %p2992_p6 }
  0x59   : > { %457 = vperm.xlu2 %2913, %v407_v30   ;;  %2443 = vmatpush.msk.msra.mxu2 %vm952_vm12, %v3086_v56  ;;  %vm939_vm5 = vcmp.eq.s32.totalorder %v3359_v44, %v3466_v14  ;;  %vm940_vm6 = vcmp.eq.s32.totalorder %v3371_v50, %v3466_v14  ;;  %vm941_vm7 = vcmp.eq.s32.totalorder %v3374_v51, %v3466_v14  ;;  %v612_v30 = vadd.s32 16, %v3354_v39 }
  0x5a   : > { %2459 = vmatpush.msk.msra.mxu3 %vm953_vm13, %v3086_v56  ;;  %2428 = vmatpush.msk.msra.mxu1 %vm947_vm14, %v3086_v56  ;;  %p2998_p13 = pnand %p2997_p11, %p2993_p7 }
  0x5b   : > { %2281 = vmatmul.msk.f32.gmra.mxu0 %vm495_vm0, %v376_v18  ;;  %2444 = vmatpush.msk.msra.mxu2 %vm948_vm15, %v3086_v56  ;;  %v615_v18 = vadd.s32 40, %v3354_v39 }
  0x5c   : > { %2460 = vmatpush.msk.msra.mxu3 %vm949_vm1, %v3086_v56  ;;  %2429 = vmatpush.msk.msra.mxu1 %vm943_vm2, %v3086_v56 }
  0x5d   : > { %2445 = vmatpush.msk.msra.mxu2 %vm944_vm3, %v3086_v56 }
  0x5e   : > { %462 = vperm.xlu0 %2911, %v408_v20   ;;  %2461 = vmatpush.msk.msra.mxu3 %vm945_vm4, %v3086_v56  ;;  %v3485_v20 = vadd.s32 1, %v3469_v15 }
  0x5f   : > { %467 = vperm.xlu1 %2912, %v409_v22   ;;  %v3489_v22 = vmul.u32 4, %v653_v17  ;;  %2430 = vmatpush.msk.msra.mxu1 %vm939_vm5, %v3086_v56 }
  0x60   : > { %2446 = vmatpush.msk.msra.mxu2 %vm940_vm6, %v3086_v56  ;;  %2462 = vmatpush.msk.msra.mxu3 %vm941_vm7, %v3086_v56  ;;  %vm935_vm8 = vcmp.eq.s32.totalorder %v3359_v44, %v3485_v20  ;;  %vm936_vm9 = vcmp.eq.s32.totalorder %v3371_v50, %v3485_v20  ;;  %vm937_vm10 = vcmp.eq.s32.totalorder %v3374_v51, %v3485_v20 }
  0x61   : > { %472 = vperm.xlu2 %2913, %v410_v32   ;;  %2431 = vmatpush.msk.msra.mxu1 %vm935_vm8, %v3086_v56 }
  0x62   : > { %2447 = vmatpush.msk.msra.mxu2 %vm936_vm9, %v3086_v56  ;;  %2463 = vmatpush.msk.msra.mxu3 %vm937_vm10, %v3086_v56 }
  0x63   : > { %2282 = vmatmul.msk.f32.gmra.mxu0 %vm495_vm0, %v377_v21  ;;  %v3487_v21 = vmul.u32 4, %v654_v16  ;;  %v3878_v16 = vadd.s32 3, %v3452_v10 }
  0x66   : > { %477 = vperm.xlu0 %2911, %v411_v23   ;;  %v652_v23 = vadd.s32 1, %v615_v18 }
  0x67   : > { %482 = vperm.xlu1 %2912, %v412_v25   ;;  %v3503_v25 = vadd.s32 1, %v3487_v21 }
  0x69   : > { %487 = vperm.xlu2 %2913, %v413_v34   ;;  %vm931_vm11 = vcmp.eq.s32.totalorder %v3359_v44, %v3503_v25  ;;  %vm932_vm12 = vcmp.eq.s32.totalorder %v3371_v50, %v3503_v25  ;;  %vm933_vm13 = vcmp.eq.s32.totalorder %v3374_v51, %v3503_v25  ;;  %v649_v34 = vadd.s32 1, %v612_v30 }
  0x6a   : > { %2432 = vmatpush.msk.msra.mxu1 %vm931_vm11, %v3086_v56  ;;  %2448 = vmatpush.msk.msra.mxu2 %vm932_vm12, %v3086_v56 }
  0x6b   : > { %2283 = vmatmul.msk.f32.gmra.mxu0 %vm495_vm0, %v378_v24  ;;  %v614_v24 = vadd.s32 32, %v3354_v39  ;;  %2464 = vmatpush.msk.msra.mxu3 %vm933_vm13, %v3086_v56  ;;  %v3553_v40 = vmul.u32 4, %v649_v34 }
  0x6d   : > { %v3571_v43 = vadd.s32 1, %v3553_v40 }
  0x6e   : > { %492 = vperm.xlu0 %2911, %v414_v26   ;;  %v3508_v26 = vadd.s32 1, %v3489_v22 }
  0x6f   : > { %vm911_vm10 = vcmp.eq.s32.totalorder %v3359_v44, %v3571_v43  ;;  %vm912_vm11 = vcmp.eq.s32.totalorder %v3371_v50, %v3571_v43  ;;  %vm913_vm12 = vcmp.eq.s32.totalorder %v3374_v51, %v3571_v43 }
  0x70   : > { %vm927_vm14 = vcmp.eq.s32.totalorder %v3359_v44, %v3508_v26  ;;  %vm928_vm15 = vcmp.eq.s32.totalorder %v3371_v50, %v3508_v26  ;;  %vm929_vm1 = vcmp.eq.s32.totalorder %v3374_v51, %v3508_v26 }
  0x71   : > { %2433 = vmatpush.msk.msra.mxu1 %vm927_vm14, %v3086_v56  ;;  %2449 = vmatpush.msk.msra.mxu2 %vm928_vm15, %v3086_v56 }
  0x72   : > { %2465 = vmatpush.msk.msra.mxu3 %vm929_vm1, %v3086_v56 }
  0x73   : > { %2284 = vmatmul.msk.f32.gmra.mxu0 %vm495_vm0, %v379_v27  ;;  %v3510_v27 = vmul.u32 4, %v652_v23  ;;  %v3912_v23 = vadd.s32 3, %v3487_v21 }
  0x7b   : > { %2285 = vmatmul.msk.f32.gmra.mxu0 %vm495_vm0, %v380_v28  ;;  %v651_v28 = vadd.s32 1, %v614_v24 }
  0x7d   : > { %v3533_v32 = vmul.u32 4, %v651_v28 }
  0x7f   : > { %v3549_v37 = vadd.s32 1, %v3533_v32 }
  0x81   : > { %vm919_vm5 = vcmp.eq.s32.totalorder %v3359_v44, %v3549_v37  ;;  %vm920_vm6 = vcmp.eq.s32.totalorder %v3371_v50, %v3549_v37  ;;  %vm921_vm7 = vcmp.eq.s32.totalorder %v3374_v51, %v3549_v37 }
  0x83   : > { %2286 = vmatmul.msk.f32.gmra.mxu0 %vm495_vm0, %v381_v29  ;;  %v613_v29 = vadd.s32 24, %v3354_v39 }
  0x8b   : > { %2287 = vmatmul.msk.f32.gmra.mxu0 %vm495_vm0, %v382_v31  ;;  %v3530_v31 = vadd.s32 1, %v3510_v27 }
  0x8d   : > { %vm923_vm2 = vcmp.eq.s32.totalorder %v3359_v44, %v3530_v31  ;;  %vm924_vm3 = vcmp.eq.s32.totalorder %v3371_v50, %v3530_v31  ;;  %vm925_vm4 = vcmp.eq.s32.totalorder %v3374_v51, %v3530_v31 }
  0x8e   : > { %2434 = vmatpush.msk.msra.mxu1 %vm923_vm2, %v3086_v56  ;;  %2450 = vmatpush.msk.msra.mxu2 %vm924_vm3, %v3086_v56 }
  0x8f   : > { %2466 = vmatpush.msk.msra.mxu3 %vm925_vm4, %v3086_v56  ;;  %vm755_vm4 = vcmp.eq.s32.totalorder %v3359_v44, %v3365_v48 }
  0x90   : > { %2435 = vmatpush.msk.msra.mxu1 %vm919_vm5, %v3086_v56  ;;  %2451 = vmatpush.msk.msra.mxu2 %vm920_vm6, %v3086_v56  ;;  %vm756_vm5 = vcmp.eq.s32.totalorder %v3371_v50, %v3365_v48  ;;  %vm966_vm6 = vcmp.eq.s32.totalorder %v3614_v55, %v3368_v49 }
  0x91   : > { %2467 = vmatpush.msk.msra.mxu3 %vm921_vm7, %v3086_v56  ;;  %vm751_vm7 = vcmp.eq.s32.totalorder %v3359_v44, %v3376_v52 }
  0x93   : > { %2288 = vmatmul.msk.f32.gmra.mxu0 %vm495_vm0, %v383_v33  ;;  %v650_v33 = vadd.s32 1, %v613_v29  ;;  %v3974_v29 = vadd.s32 2, %v3510_v27 }
  0x9b   : > { %2289 = vmatmul.msk.f32.gmra.mxu0 %vm495_vm0, %v384_v35  ;;  %v611_v35 = vadd.s32 8, %v3354_v39 }
  0x9d   : > { %v648_v41 = vadd.s32 1, %v611_v35 }
  0x9f   : > { %v3573_v45 = vmul.u32 4, %v648_v41 }
  0xa1   : > { %v3592_v39 = vadd.s32 1, %v3573_v45  ;;  %v4030_v35 = vadd.s32 3, %v3573_v45 }
  0xa3   : > { %2290 = vmatmul.msk.f32.gmra.mxu0 %vm495_vm0, %v385_v36  ;;  %v390_v36 = vld [vmem:[%s4617_s1 + $0x78] sm:$0xff]  ;;  %vm907_vm13 = vcmp.eq.s32.totalorder %v3359_v44, %v3592_v39  ;;  %vm908_vm14 = vcmp.eq.s32.totalorder %v3371_v50, %v3592_v39  ;;  %vm909_vm15 = vcmp.eq.s32.totalorder %v3374_v51, %v3592_v39 }
  0xab   : > { %2291 = vmatmul.msk.f32.gmra.mxu0 %vm495_vm0, %v386_v38  ;;  %v3551_v38 = vmul.u32 4, %v650_v33 }
  0xad   : > { %v3566_v42 = vadd.s32 1, %v3551_v38  ;;  %v3983_v30 = vadd.s32 3, %v3551_v38 }
  0xaf   : > { %vm916_vm8 = vcmp.eq.s32.totalorder %v3371_v50, %v3566_v42  ;;  %vm917_vm9 = vcmp.eq.s32.totalorder %v3374_v51, %v3566_v42 }
  0xb0   : > { %2452 = vmatpush.msk.msra.mxu2 %vm916_vm8, %v3086_v56  ;;  %2468 = vmatpush.msk.msra.mxu3 %vm917_vm9, %v3086_v56  ;;  %vm962_vm8 = vcmp.eq.s32.totalorder %v3614_v55, %v3390_v57  ;;  %vm747_vm9 = vcmp.eq.s32.totalorder %v3359_v44, %v3392_v58  ;;  %v3654_v57 = vadd.s32 3, %v3365_v48 }
  0xb2   : > { %2453 = vmatpush.msk.msra.mxu2 %vm912_vm11, %v3086_v56  ;;  %2469 = vmatpush.msk.msra.mxu3 %vm913_vm12, %v3086_v56  ;;  %vm958_vm11 = vcmp.eq.s32.totalorder %v3614_v55, %v3403_v62  ;;  %vm743_vm12 = vcmp.eq.s32.totalorder %v3359_v44, %v3407_v63  ;;  %v3742_v62 = vadd.s32 3, %v3392_v58 }
  0xb3   : > { %2292 = vmatmul.msk.f32.gmra.mxu0 %vm495_vm0, %v387_v47  ;;  %v3595_v47 = vmul.u32 4, %v647_v46 }
  0xb4   : > { %2454 = vmatpush.msk.msra.mxu2 %vm908_vm14, %v3086_v56  ;;  %2470 = vmatpush.msk.msra.mxu3 %vm909_vm15, %v3086_v56  ;;  %vm954_vm14 = vcmp.eq.s32.totalorder %v3614_v55, %v3425_v4  ;;  %vm1743_vm15 = vcmp.eq.s32.totalorder %v3359_v44, %v3654_v57  ;;  %v3786_v4 = vadd.s32 3, %v3407_v63 }
  0xb5   : > { %v3609_v54 = vadd.s32 1, %v3595_v47  ;;  %2744 = vmatpush.msk.msrb.mxu0 %vm1743_vm15, %v3086_v56  ;;  %vm934_vm15 = vcmp.eq.s32.totalorder %v3614_v55, %v3503_v25 }
  0xb7   : > { %vm903_vm1 = vcmp.eq.s32.totalorder %v3359_v44, %v3609_v54  ;;  %vm904_vm2 = vcmp.eq.s32.totalorder %v3371_v50, %v3609_v54  ;;  %vm905_vm3 = vcmp.eq.s32.totalorder %v3374_v51, %v3609_v54 }
  0xb8   : > { %2455 = vmatpush.msk.msra.mxu2 %vm904_vm2, %v3086_v56  ;;  %2471 = vmatpush.msk.msra.mxu3 %vm905_vm3, %v3086_v56  ;;  %vm740_vm2 = vcmp.eq.s32.totalorder %v3371_v50, %v3409_v0  ;;  %vm950_vm3 = vcmp.eq.s32.totalorder %v3614_v55, %v3428_v5  ;;  %v438_v1 = vpop.permute.xlu0 %437  ;;  %v3792_v5 = vadd.s32 2, %v3365_v48 }
  0xba   : > { %2488 = vmatpush.msk.msrb.mxu2 %vm755_vm4, %v3086_v56  ;;  %2504 = vmatpush.msk.msrb.mxu3 %vm756_vm5, %v3086_v56  ;;  %vm735_vm4 = vcmp.eq.s32.totalorder %v3359_v44, %v3430_v6  ;;  %vm736_vm5 = vcmp.eq.s32.totalorder %v3371_v50, %v3430_v6 }
  0xbb   : > { %2293 = vmatmul.msk.f32.gmra.mxu0 %vm495_vm0, %v388_v3 }
  0xbc   : > { %2489 = vmatpush.msk.msrb.mxu2 %vm751_vm7, %v3086_v56  ;;  %vm731_vm7 = vcmp.eq.s32.totalorder %v3359_v44, %v3452_v10 }
  0xbe   : > { %2490 = vmatpush.msk.msrb.mxu2 %vm747_vm9, %v3086_v56  ;;  %vm727_vm9 = vcmp.eq.s32.totalorder %v3359_v44, %v3469_v15 }
  0xc0   : > { %2491 = vmatpush.msk.msrb.mxu2 %vm743_vm12, %v3086_v56  ;;  %vm1739_vm12 = vcmp.eq.s32.totalorder %v3359_v44, %v3698_v60 }
  0xc1   : > { %2745 = vmatpush.msk.msrb.mxu0 %vm1739_vm12, %v3086_v56  ;;  %vm918_vm12 = vcmp.eq.s32.totalorder %v3614_v55, %v3566_v42 }
  0xc3   : > { %2294 = vmatmul.msk.f32.gmra.mxu0 %vm495_vm0, %v389_v19  ;;  %v3900_v19 = vadd.s32 3, %v3469_v15 }
  0xcb   : > { %2295 = vmatmul.msk.f32.gmra.mxu0 %vm495_vm0, %v390_v36  ;;  %vm915_vm0 = vcmp.eq.s32.totalorder %v3359_v44, %v3566_v42  ;;  %v4039_v36 = vadd.s32 2, %v3553_v40  ;;  %v4082_v42 = vadd.s32 2, %v3595_v47 }
  0xcc   : > { %2436 = vmatpush.msk.msra.mxu1 %vm915_vm0, %v3086_v56  ;;  %vm752_vm0 = vcmp.eq.s32.totalorder %v3371_v50, %v3376_v52 }
  0xcd   : > { %2505 = vmatpush.msk.msrb.mxu3 %vm752_vm0, %v3086_v56  ;;  %vm732_vm0 = vcmp.eq.s32.totalorder %v3371_v50, %v3452_v10 }
  0xce   : > { %2437 = vmatpush.msk.msra.mxu1 %vm911_vm10, %v3086_v56  ;;  %vm748_vm10 = vcmp.eq.s32.totalorder %v3371_v50, %v3392_v58 }
  0xcf   : > { %2506 = vmatpush.msk.msrb.mxu3 %vm748_vm10, %v3086_v56  ;;  %vm728_vm10 = vcmp.eq.s32.totalorder %v3371_v50, %v3469_v15 }
  0xd0   : > { %v3597_v53 = vpop.f32.mrf.mxu0  ;;  %2438 = vmatpush.msk.msra.mxu1 %vm907_vm13, %v3086_v56  ;;  %vm744_vm13 = vcmp.eq.s32.totalorder %v3371_v50, %v3407_v63 }
  0xd1   : > { %2507 = vmatpush.msk.msrb.mxu3 %vm744_vm13, %v3086_v56  ;;  %vm723_vm13 = vcmp.eq.s32.totalorder %v3359_v44, %v3487_v21 }
  0xd2   : > { %2439 = vmatpush.msk.msra.mxu1 %vm903_vm1, %v3086_v56  ;;  %vm739_vm1 = vcmp.eq.s32.totalorder %v3359_v44, %v3409_v0 }
  0xd3   : > { %2492 = vmatpush.msk.msrb.mxu2 %vm739_vm1, %v3086_v56  ;;  %2508 = vmatpush.msk.msrb.mxu3 %vm740_vm2, %v3086_v56  ;;  %vm719_vm1 = vcmp.eq.s32.totalorder %v3359_v44, %v3489_v22  ;;  %vm720_vm2 = vcmp.eq.s32.totalorder %v3371_v50, %v3489_v22 }
  0xd4   : > { %2472 = vmatpush.msk.msrb.mxu1 %vm966_vm6, %v3086_v56  ;;  %vm946_vm6 = vcmp.eq.s32.totalorder %v3614_v55, %v3450_v9 }
  0xd5   : > { %2493 = vmatpush.msk.msrb.mxu2 %vm735_vm4, %v3086_v56  ;;  %2509 = vmatpush.msk.msrb.mxu3 %vm736_vm5, %v3086_v56  ;;  %vm715_vm4 = vcmp.eq.s32.totalorder %v3359_v44, %v3510_v27  ;;  %vm716_vm5 = vcmp.eq.s32.totalorder %v3371_v50, %v3510_v27 }
  0xd6   : > { %2473 = vmatpush.msk.msrb.mxu1 %vm962_vm8, %v3086_v56  ;;  %vm942_vm8 = vcmp.eq.s32.totalorder %v3614_v55, %v3466_v14  ;;  %v448_v14 = vpop.permute.xlu1 %447 }
  0xd7   : > { %2494 = vmatpush.msk.msrb.mxu2 %vm731_vm7, %v3086_v56  ;;  %2510 = vmatpush.msk.msrb.mxu3 %vm732_vm0, %v3086_v56  ;;  %vm711_vm7 = vcmp.eq.s32.totalorder %v3359_v44, %v3533_v32  ;;  %vm712_vm0 = vcmp.eq.s32.totalorder %v3371_v50, %v3533_v32 }
  0xd8   : > { %v3648_v49 = vpop.f32.mrf.mxu0  ;;  %2474 = vmatpush.msk.msrb.mxu1 %vm958_vm11, %v3086_v56  ;;  %vm938_vm11 = vcmp.eq.s32.totalorder %v3614_v55, %v3485_v20  ;;  %v3909_v20 = vadd.s32 2, %v3469_v15 }
  0xd9   : > { %2495 = vmatpush.msk.msrb.mxu2 %vm727_vm9, %v3086_v56  ;;  %2511 = vmatpush.msk.msrb.mxu3 %vm728_vm10, %v3086_v56  ;;  %vm1735_vm9 = vcmp.eq.s32.totalorder %v3359_v44, %v3742_v62  ;;  %vm707_vm10 = vcmp.eq.s32.totalorder %v3359_v44, %v3551_v38 }
  0xda   : > { %2475 = vmatpush.msk.msrb.mxu1 %vm954_vm14, %v3086_v56  ;;  %vm724_vm14 = vcmp.eq.s32.totalorder %v3371_v50, %v3487_v21  ;;  %2746 = vmatpush.msk.msrb.mxu0 %vm1735_vm9, %v3086_v56  ;;  %vm757_vm9 = vcmp.eq.s32.totalorder %v3374_v51, %v3365_v48 }
  0xdb   : > { %2496 = vmatpush.msk.msrb.mxu2 %vm723_vm13, %v3086_v56  ;;  %2512 = vmatpush.msk.msrb.mxu3 %vm724_vm14, %v3086_v56  ;;  %vm703_vm13 = vcmp.eq.s32.totalorder %v3359_v44, %v3553_v40  ;;  %vm704_vm14 = vcmp.eq.s32.totalorder %v3371_v50, %v3553_v40 }
  0xdc   : > { %2476 = vmatpush.msk.msrb.mxu1 %vm950_vm3, %v3086_v56  ;;  %vm930_vm3 = vcmp.eq.s32.totalorder %v3614_v55, %v3508_v26  ;;  %v3956_v26 = vadd.s32 2, %v3489_v22 }
  0xdd   : > { %2497 = vmatpush.msk.msrb.mxu2 %vm719_vm1, %v3086_v56  ;;  %2513 = vmatpush.msk.msrb.mxu3 %vm720_vm2, %v3086_v56  ;;  %vm699_vm1 = vcmp.eq.s32.totalorder %v3359_v44, %v3573_v45  ;;  %vm700_vm2 = vcmp.eq.s32.totalorder %v3371_v50, %v3573_v45 }
  0xde   : > { %2477 = vmatpush.msk.msrb.mxu1 %vm946_vm6, %v3086_v56  ;;  %vm926_vm6 = vcmp.eq.s32.totalorder %v3614_v55, %v3530_v31  ;;  %v453_v24 = vpop.permute.xlu1 %452  ;;  %v418_v31 = vpop.permute.xlu2 %417 }
  0xdf   : > { %2498 = vmatpush.msk.msrb.mxu2 %vm715_vm4, %v3086_v56  ;;  %2514 = vmatpush.msk.msrb.mxu3 %vm716_vm5, %v3086_v56  ;;  %vm695_vm4 = vcmp.eq.s32.totalorder %v3359_v44, %v3595_v47  ;;  %vm1731_vm5 = vcmp.eq.s32.totalorder %v3359_v44, %v3786_v4  ;;  %v4023_v34 = vadd.f32 %v3597_v53, %v418_v31 }
  0xe0   : > { %v3690_v59 = vpop.f32.mrf.mxu0  ;;  %2478 = vmatpush.msk.msrb.mxu1 %vm942_vm8, %v3086_v56  ;;  %vm922_vm8 = vcmp.eq.s32.totalorder %v3614_v55, %v3549_v37  ;;  %2747 = vmatpush.msk.msrb.mxu0 %vm1731_vm5, %v3086_v56  ;;  %vm742_vm5 = vcmp.eq.s32.totalorder %v3614_v55, %v3409_v0  ;;  %v4048_v37 = vadd.s32 3, %v3595_v47 }
  0xe1   : > { %2499 = vmatpush.msk.msrb.mxu2 %vm711_vm7, %v3086_v56  ;;  %2515 = vmatpush.msk.msrb.mxu3 %vm712_vm0, %v3086_v56  ;;  %vm906_vm7 = vcmp.eq.s32.totalorder %v3614_v55, %v3609_v54  ;;  %vm758_vm0 = vcmp.eq.s32.totalorder %v3614_v55, %v3365_v48  ;;  %v443_v48 = vpop.permute.xlu0 %442 }
  0xe2   : > { %2479 = vmatpush.msk.msrb.mxu1 %vm938_vm11, %v3086_v56  ;;  %vm708_vm11 = vcmp.eq.s32.totalorder %v3371_v50, %v3551_v38 }
  0xe3   : > { %2500 = vmatpush.msk.msrb.mxu2 %vm707_vm10, %v3086_v56  ;;  %2516 = vmatpush.msk.msrb.mxu3 %vm708_vm11, %v3086_v56  ;;  %vm754_vm10 = vcmp.eq.s32.totalorder %v3614_v55, %v3376_v52  ;;  %vm1399_vm11 = vcmp.eq.s32.totalorder %v3359_v44, %v3809_v7 }
  0xe4   : > { %2480 = vmatpush.msk.msrb.mxu1 %vm934_vm15, %v3086_v56  ;;  %vm914_vm15 = vcmp.eq.s32.totalorder %v3614_v55, %v3571_v43 }
  0xe5   : > { %2501 = vmatpush.msk.msrb.mxu2 %vm703_vm13, %v3086_v56  ;;  %2517 = vmatpush.msk.msrb.mxu3 %vm704_vm14, %v3086_v56  ;;  %vm750_vm13 = vcmp.eq.s32.totalorder %v3614_v55, %v3392_v58  ;;  %vm1395_vm14 = vcmp.eq.s32.totalorder %v3359_v44, %v3822_v8 }
  0xe6   : > { %2481 = vmatpush.msk.msrb.mxu1 %vm930_vm3, %v3086_v56  ;;  %vm910_vm3 = vcmp.eq.s32.totalorder %v3614_v55, %v3592_v39  ;;  %v433_v53 = vpop.permute.xlu1 %432 }
  0xe7   : > { %2502 = vmatpush.msk.msrb.mxu2 %vm699_vm1, %v3086_v56  ;;  %2518 = vmatpush.msk.msrb.mxu3 %vm700_vm2, %v3086_v56  ;;  %vm1727_vm1 = vcmp.eq.s32.totalorder %v3359_v44, %v3839_v13  ;;  %vm746_vm2 = vcmp.eq.s32.totalorder %v3614_v55, %v3407_v63 }
  0xe8   : > { %v3734_v61 = vpop.f32.mrf.mxu0  ;;  %2482 = vmatpush.msk.msrb.mxu1 %vm926_vm6, %v3086_v56  ;;  %vm696_vm6 = vcmp.eq.s32.totalorder %v3371_v50, %v3595_v47  ;;  %2748 = vmatpush.msk.msrb.mxu0 %vm1727_vm1, %v3086_v56  ;;  %vm730_vm1 = vcmp.eq.s32.totalorder %v3614_v55, %v3469_v15 }
  0xe9   : > { %2503 = vmatpush.msk.msrb.mxu2 %vm695_vm4, %v3086_v56  ;;  %2519 = vmatpush.msk.msrb.mxu3 %vm696_vm6, %v3086_v56  ;;  %vm745_vm4 = vcmp.eq.s32.totalorder %v3374_v51, %v3407_v63  ;;  %v3875_v63 = vadd.s32 2, %v3430_v6 }
  0xea   : > { %2483 = vmatpush.msk.msrb.mxu1 %vm922_vm8, %v3086_v56  ;;  %vm1403_vm8 = vcmp.eq.s32.totalorder %v3359_v44, %v3792_v5 }
  0xec   : > { %2484 = vmatpush.msk.msrb.mxu1 %vm918_vm12, %v3086_v56  ;;  %vm753_vm12 = vcmp.eq.s32.totalorder %v3374_v51, %v3376_v52  ;;  %v3847_v52 = vadd.s32 2, %v3409_v0 }
  0xee   : > { %2485 = vmatpush.msk.msrb.mxu1 %vm914_vm15, %v3086_v56  ;;  %vm749_vm15 = vcmp.eq.s32.totalorder %v3374_v51, %v3392_v58  ;;  %v3866_v58 = vadd.s32 3, %v3430_v6  ;;  %vm1387_vm6 = vcmp.eq.s32.totalorder %v3359_v44, %v3847_v52 }
  0xf0   : > { %v573_v2 = vpop.f32.mrf.mxu0  ;;  %2486 = vmatpush.msk.msrb.mxu1 %vm910_vm3, %v3086_v56  ;;  %vm1391_vm3 = vcmp.eq.s32.totalorder %v3359_v44, %v3830_v11 }
  0xf1   : > { %v3779_v3 = vadd.f32 %v573_v2, %v438_v1 }
  0xf2   : > { %2487 = vmatpush.msk.msrb.mxu1 %vm906_vm7, %v3086_v56  ;;  %vm741_vm7 = vcmp.eq.s32.totalorder %v3374_v51, %v3409_v0  ;;  %v3889_v0 = vadd.s32 2, %v3452_v10 }
  0xf3   : > { %1111 = vmatmul.f32.vlgmr.msra.gmra.mxu1 %v3779_v3  ;;  %1140 = vmatmul.f32.vlgmr.msra.gmra.mxu2 %v3779_v3 }
  0xf4   : > { %1169 = vmatmul.f32.vlgmr.msra.gmra.mxu3 %v3779_v3  ;;  %2536 = vmatpush.msk.msra.mxu2 %vm758_vm0, %v3086_v56  ;;  %vm738_vm0 = vcmp.eq.s32.totalorder %v3614_v55, %v3430_v6 }
  0xf5   : > { %2616 = vmatpush.msk.msra.mxu3 %vm1403_vm8, %v3086_v56  ;;  %2520 = vmatpush.msk.msra.mxu1 %vm757_vm9, %v3086_v56  ;;  %vm1723_vm8 = vcmp.eq.s32.totalorder %v3359_v44, %v3866_v58  ;;  %vm1719_vm9 = vcmp.eq.s32.totalorder %v3359_v44, %v3878_v16 }
  0xf6   : > { %2537 = vmatpush.msk.msra.mxu2 %vm754_vm10, %v3086_v56  ;;  %2749 = vmatpush.msk.msrb.mxu0 %vm1723_vm8, %v3086_v56  ;;  %vm737_vm10 = vcmp.eq.s32.totalorder %v3374_v51, %v3430_v6  ;;  %v3933_v6 = vadd.s32 3, %v3489_v22 }
  0xf7   : > { %2617 = vmatpush.msk.msra.mxu3 %vm1399_vm11, %v3086_v56  ;;  %2521 = vmatpush.msk.msra.mxu1 %vm753_vm12, %v3086_v56  ;;  %vm1383_vm11 = vcmp.eq.s32.totalorder %v3359_v44, %v3875_v63  ;;  %vm734_vm12 = vcmp.eq.s32.totalorder %v3614_v55, %v3452_v10 }
  0xf8   : > { %v576_v9 = vpop.f32.mrf.mxu0  ;;  %2538 = vmatpush.msk.msra.mxu2 %vm750_vm13, %v3086_v56  ;;  %2750 = vmatpush.msk.msrb.mxu0 %vm1719_vm9, %v3086_v56  ;;  %vm733_vm13 = vcmp.eq.s32.totalorder %v3374_v51, %v3452_v10  ;;  %v3942_v10 = vadd.s32 2, %v3487_v21  ;;  %vm721_vm9 = vcmp.eq.s32.totalorder %v3374_v51, %v3489_v22 }
  0xf9   : > { %v3832_v12 = vadd.f32 %v576_v9, %v443_v48  ;;  %2618 = vmatpush.msk.msra.mxu3 %vm1395_vm14, %v3086_v56  ;;  %2522 = vmatpush.msk.msra.mxu1 %vm749_vm15, %v3086_v56  ;;  %vm1715_vm14 = vcmp.eq.s32.totalorder %v3359_v44, %v3900_v19  ;;  %vm1379_vm15 = vcmp.eq.s32.totalorder %v3359_v44, %v3889_v0 }
  0xfa   : > { %2539 = vmatpush.msk.msra.mxu2 %vm746_vm2, %v3086_v56  ;;  %vm729_vm2 = vcmp.eq.s32.totalorder %v3374_v51, %v3469_v15  ;;  %2751 = vmatpush.msk.msrb.mxu0 %vm1715_vm14, %v3086_v56  ;;  %v3951_v15 = vadd.s32 3, %v3510_v27  ;;  %vm1371_vm8 = vcmp.eq.s32.totalorder %v3359_v44, %v3942_v10  ;;  %vm714_vm14 = vcmp.eq.s32.totalorder %v3614_v55, %v3533_v32 }
  0xfb   : > { %1114 = vmatmul.f32.gmra.mxu1 %v3832_v12  ;;  %1143 = vmatmul.f32.gmra.mxu2 %v3832_v12 }
  0xfc   : > { %1172 = vmatmul.f32.gmra.mxu3 %v3832_v12  ;;  %2523 = vmatpush.msk.msra.mxu1 %vm745_vm4, %v3086_v56  ;;  %vm1375_vm4 = vcmp.eq.s32.totalorder %v3359_v44, %v3909_v20 }
  0xfd   : > { %2619 = vmatpush.msk.msra.mxu3 %vm1391_vm3, %v3086_v56  ;;  %2540 = vmatpush.msk.msra.mxu2 %vm742_vm5, %v3086_v56  ;;  %vm1711_vm3 = vcmp.eq.s32.totalorder %v3359_v44, %v3912_v23  ;;  %vm726_vm5 = vcmp.eq.s32.totalorder %v3614_v55, %v3487_v21 }
  0xfe   : > { %2524 = vmatpush.msk.msra.mxu1 %vm741_vm7, %v3086_v56  ;;  %vm1707_vm7 = vcmp.eq.s32.totalorder %v3359_v44, %v3933_v6  ;;  %2752 = vmatpush.msk.msrb.mxu0 %vm1711_vm3, %v3086_v56  ;;  %vm710_vm3 = vcmp.eq.s32.totalorder %v3614_v55, %v3551_v38 }
  0xff   : > { %2620 = vmatpush.msk.msra.mxu3 %vm1387_vm6, %v3086_v56  ;;  %2541 = vmatpush.msk.msra.mxu2 %vm738_vm0, %v3086_v56  ;;  %vm725_vm6 = vcmp.eq.s32.totalorder %v3374_v51, %v3487_v21  ;;  %vm722_vm0 = vcmp.eq.s32.totalorder %v3614_v55, %v3489_v22  ;;  %v3965_v21 = vadd.s32 3, %v3533_v32  ;;  %v4002_v22 = vadd.s32 2, %v3533_v32 }
 0x100   : > { %v579_v17 = vpop.f32.mrf.mxu0  ;;  %2525 = vmatpush.msk.msra.mxu1 %vm737_vm10, %v3086_v56  ;;  %2753 = vmatpush.msk.msrb.mxu0 %vm1707_vm7, %v3086_v56  ;;  %vm718_vm10 = vcmp.eq.s32.totalorder %v3614_v55, %v3510_v27  ;;  %vm706_vm7 = vcmp.eq.s32.totalorder %v3614_v55, %v3553_v40 }
 0x101   : > { %v3893_v18 = vadd.f32 %v579_v17, %v448_v14  ;;  %2621 = vmatpush.msk.msra.mxu3 %vm1383_vm11, %v3086_v56  ;;  %2542 = vmatpush.msk.msra.mxu2 %vm734_vm12, %v3086_v56  ;;  %vm1703_vm11 = vcmp.eq.s32.totalorder %v3359_v44, %v3951_v15  ;;  %vm1367_vm12 = vcmp.eq.s32.totalorder %v3359_v44, %v3956_v26 }
 0x102   : > { %2526 = vmatpush.msk.msra.mxu1 %vm733_vm13, %v3086_v56  ;;  %vm717_vm13 = vcmp.eq.s32.totalorder %v3374_v51, %v3510_v27  ;;  %2754 = vmatpush.msk.msrb.mxu0 %vm1703_vm11, %v3086_v56  ;;  %v4013_v27 = vadd.s32 3, %v3553_v40  ;;  %vm701_vm11 = vcmp.eq.s32.totalorder %v3374_v51, %v3573_v45 }
 0x103   : > { %1117 = vmatmul.f32.gmra.mxu1 %v3893_v18  ;;  %1146 = vmatmul.f32.gmra.mxu2 %v3893_v18 }
 0x104   : > { %1175 = vmatmul.f32.gmra.mxu3 %v3893_v18  ;;  %2543 = vmatpush.msk.msra.mxu2 %vm730_vm1, %v3086_v56  ;;  %vm1363_vm1 = vcmp.eq.s32.totalorder %v3359_v44, %v3974_v29 }
 0x105   : > { %2622 = vmatpush.msk.msra.mxu3 %vm1379_vm15, %v3086_v56  ;;  %2527 = vmatpush.msk.msra.mxu1 %vm729_vm2, %v3086_v56  ;;  %vm1699_vm15 = vcmp.eq.s32.totalorder %v3359_v44, %v3965_v21  ;;  %vm713_vm2 = vcmp.eq.s32.totalorder %v3374_v51, %v3533_v32  ;;  %v4020_v32 = vadd.s32 2, %v3551_v38 }
 0x106   : > { %2544 = vmatpush.msk.msra.mxu2 %vm726_vm5, %v3086_v56  ;;  %2755 = vmatpush.msk.msrb.mxu0 %vm1699_vm15, %v3086_v56  ;;  %vm709_vm5 = vcmp.eq.s32.totalorder %v3374_v51, %v3551_v38  ;;  %v423_v38 = vpop.permute.xlu2 %422  ;;  %vm697_vm15 = vcmp.eq.s32.totalorder %v3374_v51, %v3595_v47 }
 0x107   : > { %2623 = vmatpush.msk.msra.mxu3 %vm1375_vm4, %v3086_v56  ;;  %2528 = vmatpush.msk.msra.mxu1 %vm725_vm6, %v3086_v56  ;;  %vm1695_vm4 = vcmp.eq.s32.totalorder %v3359_v44, %v3983_v30  ;;  %vm1359_vm6 = vcmp.eq.s32.totalorder %v3359_v44, %v4002_v22  ;;  %v4085_v43 = vadd.f32 %v3648_v49, %v423_v38 }
 0x108   : > { %v582_v25 = vpop.f32.mrf.mxu0  ;;  %2545 = vmatpush.msk.msra.mxu2 %vm722_vm0, %v3086_v56  ;;  %2756 = vmatpush.msk.msrb.mxu0 %vm1695_vm4, %v3086_v56  ;;  %vm705_vm0 = vcmp.eq.s32.totalorder %v3374_v51, %v3553_v40  ;;  %v4067_v40 = vadd.s32 2, %v3573_v45  ;;  %vm1404_vm4 = vcmp.eq.s32.totalorder %v3371_v50, %v3792_v5  ;;  %v4167_v49 = vadd.f32 %v3734_v61, %v433_v53  ;;  %v4192_v61 = vpop.permute.xlu1 %467 }
 0x109   : > { %v3958_v28 = vadd.f32 %v582_v25, %v453_v24  ;;  %2624 = vmatpush.msk.msra.mxu3 %vm1371_vm8, %v3086_v56  ;;  %2529 = vmatpush.msk.msra.mxu1 %vm721_vm9, %v3086_v56  ;;  %vm1691_vm8 = vcmp.eq.s32.totalorder %v3359_v44, %v4013_v27  ;;  %vm1355_vm9 = vcmp.eq.s32.totalorder %v3359_v44, %v4020_v32 }
 0x10a   : > { %2546 = vmatpush.msk.msra.mxu2 %vm718_vm10, %v3086_v56  ;;  %vm702_vm10 = vcmp.eq.s32.totalorder %v3614_v55, %v3573_v45  ;;  %2757 = vmatpush.msk.msrb.mxu0 %vm1691_vm8, %v3086_v56  ;;  %v428_v45 = vpop.permute.xlu0 %427  ;;  %vm1397_vm8 = vcmp.eq.s32.totalorder %v3374_v51, %v3822_v8 }
 0x10b   : > { %1120 = vmatmul.f32.gmra.mxu1 %v3958_v28  ;;  %1149 = vmatmul.f32.gmra.mxu2 %v3958_v28  ;;  %v4127_v39 = vadd.f32 %v3690_v59, %v428_v45 }
 0x10c   : > { %1178 = vmatmul.f32.gmra.mxu3 %v3958_v28  ;;  %2530 = vmatpush.msk.msra.mxu1 %vm717_vm13, %v3086_v56  ;;  %vm1351_vm13 = vcmp.eq.s32.totalorder %v3359_v44, %v4039_v36 }
 0x10d   : > { %2625 = vmatpush.msk.msra.mxu3 %vm1367_vm12, %v3086_v56  ;;  %2547 = vmatpush.msk.msra.mxu2 %vm714_vm14, %v3086_v56  ;;  %vm1687_vm12 = vcmp.eq.s32.totalorder %v3359_v44, %v4030_v35  ;;  %vm698_vm14 = vcmp.eq.s32.totalorder %v3614_v55, %v3595_v47 }
 0x10e   : > { %2531 = vmatpush.msk.msra.mxu1 %vm713_vm2, %v3086_v56  ;;  %2758 = vmatpush.msk.msrb.mxu0 %vm1687_vm12, %v3086_v56  ;;  %vm1405_vm2 = vcmp.eq.s32.totalorder %v3374_v51, %v3792_v5  ;;  %vm1392_vm12 = vcmp.eq.s32.totalorder %v3371_v50, %v3830_v11  ;;  %v458_v59 = vpop.permute.xlu2 %457 }
 0x10f   : > { %2626 = vmatpush.msk.msra.mxu3 %vm1363_vm1, %v3086_v56  ;;  %2548 = vmatpush.msk.msra.mxu2 %vm710_vm3, %v3086_v56  ;;  %vm1683_vm1 = vcmp.eq.s32.totalorder %v3359_v44, %v4048_v37  ;;  %vm1347_vm3 = vcmp.eq.s32.totalorder %v3359_v44, %v4067_v40 }
 0x110   : > { %v4015_v33 = vpop.f32.mrf.mxu0  ;;  %2532 = vmatpush.msk.msra.mxu1 %vm709_vm5, %v3086_v56  ;;  %2759 = vmatpush.msk.msrb.mxu0 %vm1683_vm1, %v3086_v56  ;;  %vm1401_vm5 = vcmp.eq.s32.totalorder %v3374_v51, %v3809_v7  ;;  %vm1394_vm1 = vcmp.eq.s32.totalorder %v3614_v55, %v3830_v11 }
 0x111   : > { %2627 = vmatpush.msk.msra.mxu3 %vm1359_vm6, %v3086_v56  ;;  %2549 = vmatpush.msk.msra.mxu2 %vm706_vm7, %v3086_v56  ;;  %vm1343_vm6 = vcmp.eq.s32.totalorder %v3359_v44, %v4082_v42  ;;  %vm1400_vm7 = vcmp.eq.s32.totalorder %v3371_v50, %v3809_v7 }
 0x112   : > { %2533 = vmatpush.msk.msra.mxu1 %vm705_vm0, %v3086_v56  ;;  %vm1406_vm0 = vcmp.eq.s32.totalorder %v3614_v55, %v3792_v5  ;;  %v4152_v47 = vpop.permute.xlu0 %462  ;;  %v4209_v5 = vadd.f32 %v4015_v33, %v458_v59 }
 0x113   : > { %1198 = vmatmul.f32.vlgmr.msrb.gmra.mxu1 %v3779_v3  ;;  %1227 = vmatmul.f32.vlgmr.msrb.gmra.mxu2 %v4023_v34 }
 0x114   : > { %1256 = vmatmul.f32.vlgmr.msrb.gmra.mxu3 %v4023_v34  ;;  %2550 = vmatpush.msk.msra.mxu2 %vm702_vm10, %v3086_v56  ;;  %vm1402_vm10 = vcmp.eq.s32.totalorder %v3614_v55, %v3809_v7 }
 0x115   : > { %2628 = vmatpush.msk.msra.mxu3 %vm1355_vm9, %v3086_v56  ;;  %2534 = vmatpush.msk.msra.mxu1 %vm701_vm11, %v3086_v56  ;;  %vm1396_vm9 = vcmp.eq.s32.totalorder %v3371_v50, %v3822_v8  ;;  %vm1393_vm11 = vcmp.eq.s32.totalorder %v3374_v51, %v3830_v11 }
 0x116   : > { %2551 = vmatpush.msk.msra.mxu2 %vm698_vm14, %v3086_v56  ;;  %vm1389_vm14 = vcmp.eq.s32.totalorder %v3374_v51, %v3847_v52  ;;  %v4230_v7 = vpop.permute.xlu2 %472 }
 0x117   : > { %2629 = vmatpush.msk.msra.mxu3 %vm1351_vm13, %v3086_v56  ;;  %2535 = vmatpush.msk.msra.mxu1 %vm697_vm15, %v3086_v56  ;;  %vm1398_vm13 = vcmp.eq.s32.totalorder %v3614_v55, %v3822_v8  ;;  %vm1388_vm15 = vcmp.eq.s32.totalorder %v3371_v50, %v3847_v52  ;;  %v483_v8 = vpop.permute.xlu1 %482 }
 0x118   : > { %v4077_v41 = vpop.f32.mrf.mxu0  ;;  %2648 = vmatpush.msk.msrb.mxu2 %vm1405_vm2, %v3086_v56  ;;  %vm1385_vm2 = vcmp.eq.s32.totalorder %v3374_v51, %v3875_v63 }
 0x119   : > { %2630 = vmatpush.msk.msra.mxu3 %vm1347_vm3, %v3086_v56  ;;  %2632 = vmatpush.msk.msrb.mxu1 %vm1404_vm4, %v3086_v56  ;;  %vm1384_vm3 = vcmp.eq.s32.totalorder %v3371_v50, %v3875_v63  ;;  %vm1390_vm4 = vcmp.eq.s32.totalorder %v3614_v55, %v3847_v52  ;;  %v4248_v11 = vadd.f32 %v4077_v41, %v4152_v47 }
 0x11a   : > { %2649 = vmatpush.msk.msrb.mxu2 %vm1401_vm5, %v3086_v56  ;;  %vm1381_vm5 = vcmp.eq.s32.totalorder %v3374_v51, %v3889_v0  ;;  %v478_v1 = vpop.permute.xlu0 %477 }
 0x11b   : > { %1201 = vmatmul.f32.gmra.mxu1 %v3832_v12  ;;  %1230 = vmatmul.f32.gmra.mxu2 %v4085_v43 }
 0x11c   : > { %1259 = vmatmul.f32.gmra.mxu3 %v4085_v43  ;;  %2633 = vmatpush.msk.msrb.mxu1 %vm1400_vm7, %v3086_v56  ;;  %vm1377_vm7 = vcmp.eq.s32.totalorder %v3374_v51, %v3909_v20 }
 0x11d   : > { %2631 = vmatpush.msk.msra.mxu3 %vm1343_vm6, %v3086_v56  ;;  %2650 = vmatpush.msk.msrb.mxu2 %vm1397_vm8, %v3086_v56  ;;  %vm1380_vm6 = vcmp.eq.s32.totalorder %v3371_v50, %v3889_v0  ;;  %vm1376_vm8 = vcmp.eq.s32.totalorder %v3371_v50, %v3909_v20 }
 0x11e   : > { %2634 = vmatpush.msk.msrb.mxu1 %vm1396_vm9, %v3086_v56  ;;  %vm1373_vm9 = vcmp.eq.s32.totalorder %v3374_v51, %v3942_v10  ;;  %v488_v12 = vpop.permute.xlu2 %487 }
 0x11f   : > { %2664 = vmatpush.msk.msrb.mxu3 %vm1406_vm0, %v3086_v56  ;;  %2651 = vmatpush.msk.msrb.mxu2 %vm1393_vm11, %v3086_v56  ;;  %vm1386_vm0 = vcmp.eq.s32.totalorder %v3614_v55, %v3875_v63  ;;  %vm1372_vm11 = vcmp.eq.s32.totalorder %v3371_v50, %v3942_v10 }
 0x120   : > { %v4122_v46 = vpop.f32.mrf.mxu0  ;;  %2635 = vmatpush.msk.msrb.mxu1 %vm1392_vm12, %v3086_v56  ;;  %vm1369_vm12 = vcmp.eq.s32.totalorder %v3374_v51, %v3956_v26 }
 0x121   : > { %2665 = vmatpush.msk.msrb.mxu3 %vm1402_vm10, %v3086_v56  ;;  %2652 = vmatpush.msk.msrb.mxu2 %vm1389_vm14, %v3086_v56  ;;  %vm1382_vm10 = vcmp.eq.s32.totalorder %v3614_v55, %v3889_v0  ;;  %vm1368_vm14 = vcmp.eq.s32.totalorder %v3371_v50, %v3956_v26  ;;  %v4287_v63 = vadd.f32 %v4122_v46, %v4192_v61 }
 0x122   : > { %2636 = vmatpush.msk.msrb.mxu1 %vm1388_vm15, %v3086_v56  ;;  %vm1365_vm15 = vcmp.eq.s32.totalorder %v3374_v51, %v3974_v29 }
 0x123   : > { %1204 = vmatmul.f32.gmra.mxu1 %v3893_v18  ;;  %1233 = vmatmul.f32.gmra.mxu2 %v4127_v39 }
 0x124   : > { %1262 = vmatmul.f32.gmra.mxu3 %v4127_v39  ;;  %2653 = vmatpush.msk.msrb.mxu2 %vm1385_vm2, %v3086_v56  ;;  %vm1364_vm2 = vcmp.eq.s32.totalorder %v3371_v50, %v3974_v29 }
 0x125   : > { %2666 = vmatpush.msk.msrb.mxu3 %vm1398_vm13, %v3086_v56  ;;  %2637 = vmatpush.msk.msrb.mxu1 %vm1384_vm3, %v3086_v56  ;;  %vm1378_vm13 = vcmp.eq.s32.totalorder %v3614_v55, %v3909_v20  ;;  %vm1361_vm3 = vcmp.eq.s32.totalorder %v3374_v51, %v4002_v22 }
 0x126   : > { %2654 = vmatpush.msk.msrb.mxu2 %vm1381_vm5, %v3086_v56  ;;  %vm1360_vm5 = vcmp.eq.s32.totalorder %v3371_v50, %v4002_v22 }
 0x127   : > { %2667 = vmatpush.msk.msrb.mxu3 %vm1394_vm1, %v3086_v56  ;;  %2638 = vmatpush.msk.msrb.mxu1 %vm1380_vm6, %v3086_v56  ;;  %vm1374_vm1 = vcmp.eq.s32.totalorder %v3614_v55, %v3942_v10  ;;  %vm1357_vm6 = vcmp.eq.s32.totalorder %v3374_v51, %v4020_v32 }
 0x128   : > { %v4163_v54 = vpop.f32.mrf.mxu0  ;;  %2655 = vmatpush.msk.msrb.mxu2 %vm1377_vm7, %v3086_v56  ;;  %vm1366_vm7 = vcmp.eq.s32.totalorder %v3614_v55, %v3974_v29 }
 0x129   : > { %2668 = vmatpush.msk.msrb.mxu3 %vm1390_vm4, %v3086_v56  ;;  %2639 = vmatpush.msk.msrb.mxu1 %vm1376_vm8, %v3086_v56  ;;  %vm1370_vm4 = vcmp.eq.s32.totalorder %v3614_v55, %v3956_v26  ;;  %vm1353_vm8 = vcmp.eq.s32.totalorder %v3374_v51, %v4039_v36  ;;  %v4327_v18 = vadd.f32 %v4163_v54, %v4230_v7 }
 0x12a   : > { %2656 = vmatpush.msk.msrb.mxu2 %vm1373_vm9, %v3086_v56  ;;  %vm1362_vm9 = vcmp.eq.s32.totalorder %v3614_v55, %v4002_v22 }
 0x12b   : > { %1207 = vmatmul.f32.gmra.mxu1 %v3958_v28  ;;  %1236 = vmatmul.f32.gmra.mxu2 %v4167_v49 }
 0x12c   : > { %1265 = vmatmul.f32.gmra.mxu3 %v4167_v49  ;;  %2640 = vmatpush.msk.msrb.mxu1 %vm1372_vm11, %v3086_v56  ;;  %vm1349_vm11 = vcmp.eq.s32.totalorder %v3374_v51, %v4067_v40 }
 0x12d   : > { %2669 = vmatpush.msk.msrb.mxu3 %vm1386_vm0, %v3086_v56  ;;  %2657 = vmatpush.msk.msrb.mxu2 %vm1369_vm12, %v3086_v56  ;;  %vm1356_vm0 = vcmp.eq.s32.totalorder %v3371_v50, %v4020_v32  ;;  %vm1358_vm12 = vcmp.eq.s32.totalorder %v3614_v55, %v4020_v32 }
 0x12e   : > { %2641 = vmatpush.msk.msrb.mxu1 %vm1368_vm14, %v3086_v56  ;;  %vm1345_vm14 = vcmp.eq.s32.totalorder %v3374_v51, %v4082_v42 }
 0x12f   : > { %2670 = vmatpush.msk.msrb.mxu3 %vm1382_vm10, %v3086_v56  ;;  %2658 = vmatpush.msk.msrb.mxu2 %vm1365_vm15, %v3086_v56  ;;  %vm1352_vm10 = vcmp.eq.s32.totalorder %v3371_v50, %v4039_v36  ;;  %vm1354_vm15 = vcmp.eq.s32.totalorder %v3614_v55, %v4039_v36 }
 0x130   : > { %v597_v2 = vpop.f32.mrf.mxu0  ;;  %2642 = vmatpush.msk.msrb.mxu1 %vm1364_vm2, %v3086_v56  ;;  %vm1745_vm2 = vcmp.eq.s32.totalorder %v3374_v51, %v3654_v57 }
 0x131   : > { %v4204_v3 = vadd.f32 %v597_v2, %v478_v1  ;;  %2671 = vmatpush.msk.msrb.mxu3 %vm1378_vm13, %v3086_v56  ;;  %2659 = vmatpush.msk.msrb.mxu2 %vm1361_vm3, %v3086_v56  ;;  %vm1348_vm13 = vcmp.eq.s32.totalorder %v3371_v50, %v4067_v40  ;;  %vm1744_vm3 = vcmp.eq.s32.totalorder %v3371_v50, %v3654_v57 }
 0x132   : > { %2643 = vmatpush.msk.msrb.mxu1 %vm1360_vm5, %v3086_v56  ;;  %vm1741_vm5 = vcmp.eq.s32.totalorder %v3374_v51, %v3698_v60 }
 0x133   : > { %1285 = vmatmul.f32.vlgmr.msra.gmra.mxu1 %v4023_v34  ;;  %1314 = vmatmul.f32.vlgmr.msra.gmra.mxu2 %v4023_v34 }
 0x134   : > { %1551 = vmatmul.f32.vlgmr.msra.gmra.mxu3 %v4209_v5  ;;  %1891 = vmatmul.f32.vlgmr.msrb.gmra.mxu0 %v4204_v3 }
 0x135   : > { %2672 = vmatpush.msk.msrb.mxu3 %vm1374_vm1, %v3086_v56  ;;  %2660 = vmatpush.msk.msrb.mxu2 %vm1357_vm6, %v3086_v56  ;;  %vm1344_vm1 = vcmp.eq.s32.totalorder %v3371_v50, %v4082_v42  ;;  %vm1740_vm6 = vcmp.eq.s32.totalorder %v3371_v50, %v3698_v60 }
 0x136   : > { %2644 = vmatpush.msk.msrb.mxu1 %vm1356_vm0, %v3086_v56  ;;  %vm1737_vm0 = vcmp.eq.s32.totalorder %v3374_v51, %v3742_v62 }
 0x137   : > { %2673 = vmatpush.msk.msrb.mxu3 %vm1370_vm4, %v3086_v56  ;;  %2661 = vmatpush.msk.msrb.mxu2 %vm1353_vm8, %v3086_v56  ;;  %vm1350_vm4 = vcmp.eq.s32.totalorder %v3614_v55, %v4067_v40  ;;  %vm1746_vm8 = vcmp.eq.s32.totalorder %v3614_v55, %v3654_v57  ;;  %v493_v57 = vpop.permute.xlu0 %492 }
 0x138   : > { %v600_v48 = vpop.f32.mrf.mxu0  ;;  %2645 = vmatpush.msk.msrb.mxu1 %vm1352_vm10, %v3086_v56  ;;  %vm1733_vm10 = vcmp.eq.s32.totalorder %v3374_v51, %v3786_v4 }
 0x139   : > { %v4242_v9 = vadd.f32 %v600_v48, %v483_v8  ;;  %2674 = vmatpush.msk.msrb.mxu3 %vm1366_vm7, %v3086_v56  ;;  %2662 = vmatpush.msk.msrb.mxu2 %vm1349_vm11, %v3086_v56  ;;  %vm1346_vm7 = vcmp.eq.s32.totalorder %v3614_v55, %v4082_v42  ;;  %vm1742_vm11 = vcmp.eq.s32.totalorder %v3614_v55, %v3698_v60  ;;  %v2047_v8 = vld [vmem:[%s3242_s9 + $0x20] sm:$0xff] }
 0x13a   : > { %2646 = vmatpush.msk.msrb.mxu1 %vm1348_vm13, %v3086_v56  ;;  %vm1738_vm13 = vcmp.eq.s32.totalorder %v3614_v55, %v3742_v62 }
 0x13b   : > { %1288 = vmatmul.f32.gmra.mxu1 %v4085_v43  ;;  %1317 = vmatmul.f32.gmra.mxu2 %v4085_v43  ;;  %v359_v43 = vld [vmem:[#allocation2 + $0x30] sm:$0xff] }
 0x13c   : > { %1554 = vmatmul.f32.gmra.mxu3 %v4248_v11  ;;  %1894 = vmatmul.f32.gmra.mxu0 %v4242_v9 }
 0x13d   : > { %2675 = vmatpush.msk.msrb.mxu3 %vm1362_vm9, %v3086_v56  ;;  %2663 = vmatpush.msk.msrb.mxu2 %vm1345_vm14, %v3086_v56  ;;  %vm1736_vm9 = vcmp.eq.s32.totalorder %v3371_v50, %v3742_v62  ;;  %vm1729_vm14 = vcmp.eq.s32.totalorder %v3374_v51, %v3839_v13 }
 0x13e   : > { %2647 = vmatpush.msk.msrb.mxu1 %vm1344_vm1, %v3086_v56  ;;  %vm1734_vm1 = vcmp.eq.s32.totalorder %v3614_v55, %v3786_v4 }
 0x13f   : > { %2676 = vmatpush.msk.msrb.mxu3 %vm1358_vm12, %v3086_v56  ;;  %2776 = vmatpush.msk.msra.mxu2 %vm1745_vm2, %v3086_v56  ;;  %vm1732_vm12 = vcmp.eq.s32.totalorder %v3371_v50, %v3786_v4  ;;  %vm1725_vm2 = vcmp.eq.s32.totalorder %v3374_v51, %v3866_v58 }
 0x140   : > { %v603_v52 = vpop.f32.mrf.mxu0  ;;  %2760 = vmatpush.msk.msra.mxu1 %vm1744_vm3, %v3086_v56  ;;  %vm1724_vm3 = vcmp.eq.s32.totalorder %v3371_v50, %v3866_v58 }
 0x141   : > { %v4281_v14 = vadd.f32 %v603_v52, %v488_v12  ;;  %2677 = vmatpush.msk.msrb.mxu3 %vm1354_vm15, %v3086_v56  ;;  %2777 = vmatpush.msk.msra.mxu2 %vm1741_vm5, %v3086_v56  ;;  %vm1728_vm15 = vcmp.eq.s32.totalorder %v3371_v50, %v3839_v13  ;;  %vm1721_vm5 = vcmp.eq.s32.totalorder %v3374_v51, %v3878_v16 }
 0x142   : > { %2761 = vmatpush.msk.msra.mxu1 %vm1740_vm6, %v3086_v56  ;;  %vm1720_vm6 = vcmp.eq.s32.totalorder %v3371_v50, %v3878_v16 }
 0x143   : > { %1291 = vmatmul.f32.gmra.mxu1 %v4127_v39  ;;  %1320 = vmatmul.f32.gmra.mxu2 %v4127_v39  ;;  %v2043_v39 = vld [vmem:[%s3242_s9] sm:$0xff] }
 0x144   : > { %1557 = vmatmul.f32.gmra.mxu3 %v4287_v63  ;;  %1897 = vmatmul.f32.gmra.mxu0 %v4281_v14 }
 0x145   : > { %2678 = vmatpush.msk.msrb.mxu3 %vm1350_vm4, %v3086_v56  ;;  %2778 = vmatpush.msk.msra.mxu2 %vm1737_vm0, %v3086_v56  ;;  %vm1730_vm4 = vcmp.eq.s32.totalorder %v3614_v55, %v3839_v13  ;;  %vm1726_vm0 = vcmp.eq.s32.totalorder %v3614_v55, %v3866_v58 }
 0x146   : > { %2762 = vmatpush.msk.msra.mxu1 %vm1736_vm9, %v3086_v56  ;;  %vm1713_vm9 = vcmp.eq.s32.totalorder %v3374_v51, %v3912_v23 }
 0x147   : > { %2679 = vmatpush.msk.msrb.mxu3 %vm1346_vm7, %v3086_v56  ;;  %2779 = vmatpush.msk.msra.mxu2 %vm1733_vm10, %v3086_v56  ;;  %vm1717_vm7 = vcmp.eq.s32.totalorder %v3374_v51, %v3900_v19  ;;  %vm1722_vm10 = vcmp.eq.s32.totalorder %v3614_v55, %v3878_v16 }
 0x148   : > { %v606_v17 = vpop.f32.mrf.mxu0  ;;  %2763 = vmatpush.msk.msra.mxu1 %vm1732_vm12, %v3086_v56  ;;  %vm1709_vm12 = vcmp.eq.s32.totalorder %v3374_v51, %v3933_v6 }
 0x149   : > { %2792 = vmatpush.msk.msra.mxu3 %vm1746_vm8, %v3086_v56  ;;  %v4322_v0 = vadd.f32 %v606_v17, %v493_v57  ;;  %2780 = vmatpush.msk.msra.mxu2 %vm1729_vm14, %v3086_v56  ;;  %vm1716_vm8 = vcmp.eq.s32.totalorder %v3371_v50, %v3900_v19  ;;  %vm1708_vm14 = vcmp.eq.s32.totalorder %v3371_v50, %v3933_v6  ;;  %v367_v17 = vld [vmem:[#allocation2 + $0x40] sm:$0xff] }
 0x14a   : > { %2764 = vmatpush.msk.msra.mxu1 %vm1728_vm15, %v3086_v56  ;;  %vm1705_vm15 = vcmp.eq.s32.totalorder %v3374_v51, %v3951_v15 }
 0x14b   : > { %2793 = vmatpush.msk.msra.mxu3 %vm1742_vm11, %v3086_v56  ;;  %1294 = vmatmul.f32.gmra.mxu1 %v4167_v49  ;;  %vm1712_vm11 = vcmp.eq.s32.totalorder %v3371_v50, %v3912_v23 }
 0x14c   : > { %1323 = vmatmul.f32.gmra.mxu2 %v4167_v49  ;;  %1560 = vmatmul.f32.gmra.mxu3 %v4327_v18 }
 0x14d   : > { %1900 = vmatmul.f32.gmra.mxu0 %v4322_v0  ;;  %2794 = vmatpush.msk.msra.mxu3 %vm1738_vm13, %v3086_v56  ;;  %vm1718_vm13 = vcmp.eq.s32.totalorder %v3614_v55, %v3900_v19 }
 0x14e   : > { %2781 = vmatpush.msk.msra.mxu2 %vm1725_vm2, %v3086_v56  ;;  %2765 = vmatpush.msk.msra.mxu1 %vm1724_vm3, %v3086_v56  ;;  %vm1714_vm2 = vcmp.eq.s32.totalorder %v3614_v55, %v3912_v23  ;;  %vm1701_vm3 = vcmp.eq.s32.totalorder %v3374_v51, %v3965_v21 }
 0x14f   : > { %2795 = vmatpush.msk.msra.mxu3 %vm1734_vm1, %v3086_v56  ;;  %vm1704_vm1 = vcmp.eq.s32.totalorder %v3371_v50, %v3951_v15 }
 0x150   : > { %2782 = vmatpush.msk.msra.mxu2 %vm1721_vm5, %v3086_v56  ;;  %2766 = vmatpush.msk.msra.mxu1 %vm1720_vm6, %v3086_v56  ;;  %vm1710_vm5 = vcmp.eq.s32.totalorder %v3614_v55, %v3933_v6  ;;  %vm1697_vm6 = vcmp.eq.s32.totalorder %v3374_v51, %v3983_v30 }
 0x151   : > { %2796 = vmatpush.msk.msra.mxu3 %vm1730_vm4, %v3086_v56  ;;  %vm1700_vm4 = vcmp.eq.s32.totalorder %v3371_v50, %v3965_v21 }
 0x152   : > { %2783 = vmatpush.msk.msra.mxu2 %vm1717_vm7, %v3086_v56  ;;  %2767 = vmatpush.msk.msra.mxu1 %vm1716_vm8, %v3086_v56  ;;  %vm1696_vm7 = vcmp.eq.s32.totalorder %v3371_v50, %v3983_v30  ;;  %vm1693_vm8 = vcmp.eq.s32.totalorder %v3374_v51, %v4013_v27 }
 0x153   : > { %1580 = vmatmul.f32.vlgmr.msrb.gmra.mxu1 %v4209_v5  ;;  %2797 = vmatpush.msk.msra.mxu3 %vm1726_vm0, %v3086_v56  ;;  %vm1706_vm0 = vcmp.eq.s32.totalorder %v3614_v55, %v3951_v15 }
 0x154   : > { %1609 = vmatmul.f32.vlgmr.msrb.gmra.mxu2 %v4209_v5  ;;  %1638 = vmatmul.f32.vlgmr.msrb.gmra.mxu3 %v4209_v5 }
 0x155   : > { %2784 = vmatpush.msk.msra.mxu2 %vm1713_vm9, %v3086_v56  ;;  %2798 = vmatpush.msk.msra.mxu3 %vm1722_vm10, %v3086_v56  ;;  %vm1692_vm9 = vcmp.eq.s32.totalorder %v3371_v50, %v4013_v27  ;;  %vm1689_vm10 = vcmp.eq.s32.totalorder %v3374_v51, %v4030_v35 }
 0x156   : > { %2768 = vmatpush.msk.msra.mxu1 %vm1712_vm11, %v3086_v56  ;;  %vm1702_vm11 = vcmp.eq.s32.totalorder %v3614_v55, %v3965_v21 }
 0x157   : > { %2785 = vmatpush.msk.msra.mxu2 %vm1709_vm12, %v3086_v56  ;;  %2799 = vmatpush.msk.msra.mxu3 %vm1718_vm13, %v3086_v56  ;;  %vm1688_vm12 = vcmp.eq.s32.totalorder %v3371_v50, %v4030_v35  ;;  %vm1685_vm13 = vcmp.eq.s32.totalorder %v3374_v51, %v4048_v37 }
 0x158   : > { %2769 = vmatpush.msk.msra.mxu1 %vm1708_vm14, %v3086_v56  ;;  %vm1698_vm14 = vcmp.eq.s32.totalorder %v3614_v55, %v3983_v30 }
 0x159   : > { %2786 = vmatpush.msk.msra.mxu2 %vm1705_vm15, %v3086_v56  ;;  %2800 = vmatpush.msk.msra.mxu3 %vm1714_vm2, %v3086_v56  ;;  %vm1684_vm15 = vcmp.eq.s32.totalorder %v3371_v50, %v4048_v37  ;;  %vm1690_vm2 = vcmp.eq.s32.totalorder %v3614_v55, %v4030_v35 }
 0x15a   : > { %2770 = vmatpush.msk.msra.mxu1 %vm1704_vm1, %v3086_v56  ;;  %vm1694_vm1 = vcmp.eq.s32.totalorder %v3614_v55, %v4013_v27 }
 0x15b   : > { %1583 = vmatmul.f32.gmra.mxu1 %v4248_v11  ;;  %2787 = vmatpush.msk.msra.mxu2 %vm1701_vm3, %v3086_v56  ;;  %vm1686_vm3 = vcmp.eq.s32.totalorder %v3614_v55, %v4048_v37 }
 0x15c   : > { %1612 = vmatmul.f32.gmra.mxu2 %v4248_v11  ;;  %1641 = vmatmul.f32.gmra.mxu3 %v4248_v11 }
 0x15d   : > { %2771 = vmatpush.msk.msra.mxu1 %vm1700_vm4, %v3086_v56  ;;  %2801 = vmatpush.msk.msra.mxu3 %vm1710_vm5, %v3086_v56  ;;  %vm2023_vm4 = vcmp.lt.s32.totalorder %v3359_v44, 4 }
 0x15e   : > { %2788 = vmatpush.msk.msra.mxu2 %vm1697_vm6, %v3086_v56 }
 0x15f   : > { %2772 = vmatpush.msk.msra.mxu1 %vm1696_vm7, %v3086_v56  ;;  %2802 = vmatpush.msk.msra.mxu3 %vm1706_vm0, %v3086_v56 }
 0x160   : > { %2789 = vmatpush.msk.msra.mxu2 %vm1693_vm8, %v3086_v56 }
 0x161   : > { %2773 = vmatpush.msk.msra.mxu1 %vm1692_vm9, %v3086_v56  ;;  %2803 = vmatpush.msk.msra.mxu3 %vm1702_vm11, %v3086_v56 }
 0x162   : > { %2790 = vmatpush.msk.msra.mxu2 %vm1689_vm10, %v3086_v56 }
 0x163   : > { %1586 = vmatmul.f32.gmra.mxu1 %v4287_v63  ;;  %2804 = vmatpush.msk.msra.mxu3 %vm1698_vm14, %v3086_v56 }
 0x164   : > { %1615 = vmatmul.f32.gmra.mxu2 %v4287_v63  ;;  %1644 = vmatmul.f32.gmra.mxu3 %v4287_v63 }
 0x165   : > { %2774 = vmatpush.msk.msra.mxu1 %vm1688_vm12, %v3086_v56  ;;  %2791 = vmatpush.msk.msra.mxu2 %vm1685_vm13, %v3086_v56 }
 0x166   : > { %2805 = vmatpush.msk.msra.mxu3 %vm1694_vm1, %v3086_v56 }
 0x167   : > { %2775 = vmatpush.msk.msra.mxu1 %vm1684_vm15, %v3086_v56 }
 0x168   : > { %2806 = vmatpush.msk.msra.mxu3 %vm1690_vm2, %v3086_v56 }
 0x16a   : > { %2807 = vmatpush.msk.msra.mxu3 %vm1686_vm3, %v3086_v56 }
 0x16b   : > { %1589 = vmatmul.f32.gmra.mxu1 %v4327_v18 }
 0x16c   : > { %1618 = vmatmul.f32.gmra.mxu2 %v4327_v18  ;;  %1647 = vmatmul.f32.gmra.mxu3 %v4327_v18 }
 0x170   : > { %v1112_v50 = vpop.f32.mrf.mxu1 }
 0x173   : > { %1920 = vmatmul.f32.vlgmr.msra.gmra.mxu1 %v4204_v3 }
 0x174   : > { %1949 = vmatmul.f32.vlgmr.msra.gmra.mxu2 %v4204_v3  ;;  %1978 = vmatmul.f32.vlgmr.msra.gmra.mxu3 %v4204_v3  ;;  %v363_v3 = vld [vmem:[#allocation2 + $0x50] sm:$0xff] }
 0x176   : > { %v1141_v51 = vpop.f32.mrf.mxu2 }
 0x177   : > { %v1170_v60 = vpop.f32.mrf.mxu3 }
 0x178   : > { %v1115_v62 = vpop.f32.mrf.mxu1 }
 0x17b   : > { %1923 = vmatmul.f32.gmra.mxu1 %v4242_v9 }
 0x17c   : > { %1952 = vmatmul.f32.gmra.mxu2 %v4242_v9  ;;  %1981 = vmatmul.f32.gmra.mxu3 %v4242_v9 }
 0x17e   : > { %v1144_v55 = vpop.f32.mrf.mxu2 }
 0x17f   : > { %v1173_v4 = vpop.f32.mrf.mxu3 }
 0x180   : > { %v1118_v13 = vpop.f32.mrf.mxu1 }
 0x183   : > { %1926 = vmatmul.f32.gmra.mxu1 %v4281_v14 }
 0x184   : > { %1955 = vmatmul.f32.gmra.mxu2 %v4281_v14  ;;  %1984 = vmatmul.f32.gmra.mxu3 %v4281_v14 }
 0x186   : > { %v1147_v56 = vpop.f32.mrf.mxu2 }
 0x187   : > { %v1176_v58 = vpop.f32.mrf.mxu3 }
 0x188   : > { %v4470_v16 = vpop.f32.mrf.mxu1 }
 0x18b   : > { %1929 = vmatmul.f32.gmra.mxu1 %v4322_v0 }
 0x18c   : > { %1958 = vmatmul.f32.gmra.mxu2 %v4322_v0  ;;  %1987 = vmatmul.f32.gmra.mxu3 %v4322_v0 }
 0x18e   : > { %v1150_v19 = vpop.f32.mrf.mxu2 }
 0x18f   : > { %v1179_v20 = vpop.f32.mrf.mxu3 }
 0x190   : > { %v4475_v23 = vpop.f32.mrf.mxu1 }
 0x196   : > { %v1228_v6 = vpop.f32.mrf.mxu2 }
 0x197   : > { %v1257_v10 = vpop.f32.mrf.mxu3  ;;  %v1229_v37 = vadd.f32 %v1228_v6, %v1112_v50  ;;  %v2051_v50 = vld [vmem:[%s3242_s9 + $0x40] sm:$0xff] }
 0x198   : > { %v4477_v15 = vadd.f32 %v1257_v10, %v1141_v51  ;;  %v4479_v24 = vpop.f32.mrf.mxu1  ;;  %v2055_v6 = vld [vmem:[%s3242_s9 + $0x60] sm:$0xff] }
 0x19e   : > { %v1231_v25 = vpop.f32.mrf.mxu2 }
 0x19f   : > { %v1260_v26 = vpop.f32.mrf.mxu3  ;;  %v1232_v49 = vadd.f32 %v1231_v25, %v1115_v62 }
 0x1a0   : > { %v4481_v28 = vadd.f32 %v1260_v26, %v1144_v55  ;;  %v4483_v21 = vpop.f32.mrf.mxu1 }
 0x1a6   : > { %v1234_v29 = vpop.f32.mrf.mxu2 }
 0x1a7   : > { %v1263_v30 = vpop.f32.mrf.mxu3  ;;  %v1235_v11 = vadd.f32 %v1234_v29, %v1118_v13 }
 0x1a8   : > { %v4485_v31 = vadd.f32 %v1263_v30, %v1147_v56  ;;  %v4487_v22 = vpop.f32.mrf.mxu1 }
 0x1ae   : > { %v1237_v27 = vpop.f32.mrf.mxu2 }
 0x1af   : > { %v1266_v33 = vpop.f32.mrf.mxu3  ;;  %v1238_v62 = vadd.f32 %v1237_v27, %v4470_v16 }
 0x1b0   : > { %v4489_v32 = vadd.f32 %v1266_v33, %v1150_v19  ;;  %v1286_v34 = vpop.f32.mrf.mxu1  ;;  %v371_v19 = vld [vmem:[#allocation2 + $0x60] sm:$0xff] }
 0x1b1   : > { %v4491_v35 = vadd.f32 %v1286_v34, %v1170_v60  ;;  %v1892_v36 = vpop.f32.mrf.mxu0 }
 0x1b6   : > { %v4493_v38 = vpop.f32.mrf.mxu2 }
 0x1b7   : > { %v1552_v40 = vpop.f32.mrf.mxu3 }
 0x1b8   : > { %v1651_v41 = vadd.f32 %v1552_v40, %v1229_v37  ;;  %v1289_v42 = vpop.f32.mrf.mxu1 }
 0x1b9   : > { %v4496_v45 = vadd.f32 %v1289_v42, %v1173_v4  ;;  %v1895_v54 = vpop.f32.mrf.mxu0 }
 0x1ba   : > { %v1991_v46 = vadd.f32 %v1892_v36, %v1651_v41 }
 0x1bc   : > { %2007 = vst [vmem:[#allocation2 + $0x30] sm:$0xff] %v1991_v46  ;;  %v2027_v47 = vsel %vm2023_vm4, %v359_v43, %v1991_v46  ;;  %v2044_v43 = vld [vmem:[%s3242_s9 + $0x8] sm:$0xff] }
 0x1bd   : > { %v2059_v53 = vadd.f32 %v2043_v39, %v2027_v47  ;;  %v1316_v47 = vadd.f32 %v4493_v38, %v4475_v23 }
 0x1be   : > { %v4501_v59 = vpop.f32.mrf.mxu2 }
 0x1bf   : > { %2075 = vst [vmem:[%s3248_s23] sm:$0xff] %v2059_v53  ;;  %v1555_v61 = vpop.f32.mrf.mxu3 }
 0x1c0   : > { %v1655_v1 = vadd.f32 %v1555_v61, %v1232_v49  ;;  %v1292_v2 = vpop.f32.mrf.mxu1  ;;  %v2045_v61 = vld [vmem:[%s3242_s9 + $0x10] sm:$0xff] }
 0x1c1   : > { %v4504_v5 = vadd.f32 %v1292_v2, %v1176_v58  ;;  %v1898_v52 = vpop.f32.mrf.mxu0 }
 0x1c2   : > { %v1995_v7 = vadd.f32 %v1895_v54, %v1655_v1 }
 0x1c4   : > { %2011 = vst [vmem:[#allocation2 + $0x50] sm:$0xff] %v1995_v7  ;;  %v2031_v48 = vsel %vm2023_vm4, %v363_v3, %v1995_v7  ;;  %v2046_v3 = vld [vmem:[%s3242_s9 + $0x18] sm:$0xff] }
 0x1c5   : > { %v2063_v9 = vadd.f32 %v2047_v8, %v2031_v48  ;;  %v2048_v48 = vld [vmem:[%s3242_s9 + $0x28] sm:$0xff] }
 0x1c6   : > { %v4509_v12 = vpop.f32.mrf.mxu2 }
 0x1c7   : > { %2079 = vst [vmem:[%s3248_s23 + $0x20] sm:$0xff] %v2063_v9  ;;  %v1558_v14 = vpop.f32.mrf.mxu3 }
 0x1c8   : > { %v1659_v63 = vadd.f32 %v1558_v14, %v1235_v11  ;;  %v1295_v57 = vpop.f32.mrf.mxu1  ;;  %v1319_v11 = vadd.f32 %v4501_v59, %v4479_v24  ;;  %v2052_v24 = vld [vmem:[%s3242_s9 + $0x48] sm:$0xff] }
 0x1c9   : > { %v4512_v0 = vadd.f32 %v1295_v57, %v1179_v20 }
 0x1ca   : > { %v1999_v18 = vadd.f32 %v1898_v52, %v1659_v63  ;;  %v1901_v58 = vpop.f32.mrf.mxu0  ;;  %v2049_v63 = vld [vmem:[%s3242_s9 + $0x30] sm:$0xff] }
 0x1cc   : > { %2015 = vst [vmem:[#allocation2 + $0x40] sm:$0xff] %v1999_v18  ;;  %v2035_v51 = vsel %vm2023_vm4, %v367_v17, %v1999_v18 }
 0x1cd   : > { %v2067_v60 = vadd.f32 %v2051_v50, %v2035_v51  ;;  %v2050_v50 = vld [vmem:[%s3242_s9 + $0x38] sm:$0xff] }
 0x1cf   : > { %v4518_v55 = vpop.f32.mrf.mxu2  ;;  %2083 = vst [vmem:[%s3248_s23 + $0x40] sm:$0xff] %v2067_v60  ;;  %v1561_v4 = vpop.f32.mrf.mxu3 }
 0x1d0   : > { %v1663_v13 = vadd.f32 %v1561_v4, %v1238_v62  ;;  %v1581_v56 = vpop.f32.mrf.mxu1 }
 0x1d1   : > { %v1652_v44 = vadd.f32 %v1581_v56, %v4477_v15 }
 0x1d2   : > { %v2003_v20 = vadd.f32 %v1901_v58, %v1663_v13 }
 0x1d4   : > { %2019 = vst [vmem:[#allocation2 + $0x60] sm:$0xff] %v2003_v20  ;;  %v2039_v10 = vsel %vm2023_vm4, %v371_v19, %v2003_v20  ;;  %v2053_v19 = vld [vmem:[%s3242_s9 + $0x50] sm:$0xff] }
 0x1d5   : > { %v2071_v25 = vadd.f32 %v2055_v6, %v2039_v10 }
 0x1d7   : > { %v1610_v26 = vpop.f32.mrf.mxu2  ;;  %2087 = vst [vmem:[%s3248_s23 + $0x60] sm:$0xff] %v2071_v25  ;;  %v1639_v29 = vpop.f32.mrf.mxu3  ;;  %v2054_v25 = vld [vmem:[%s3242_s9 + $0x58] sm:$0xff] }
 0x1d8   : > { %v1584_v16 = vpop.f32.mrf.mxu1  ;;  %v1653_v53 = vadd.f32 %v1610_v26, %v4491_v35  ;;  %v1654_v54 = vadd.f32 %v1639_v29, %v1316_v47 }
 0x1d9   : > { %v1656_v15 = vadd.f32 %v1584_v16, %v4481_v28 }
 0x1df   : > { %v1613_v30 = vpop.f32.mrf.mxu2  ;;  %v1642_v27 = vpop.f32.mrf.mxu3 }
 0x1e0   : > { %v1587_v33 = vpop.f32.mrf.mxu1  ;;  %v1657_v28 = vadd.f32 %v1613_v30, %v4496_v45  ;;  %v1658_v52 = vadd.f32 %v1642_v27, %v1319_v11 }
 0x1e1   : > { %v1660_v57 = vadd.f32 %v1587_v33, %v4485_v31  ;;  %v1322_v31 = vadd.f32 %v4509_v12, %v4483_v21  ;;  %v2056_v21 = vld [vmem:[%s3242_s9 + $0x68] sm:$0xff] }
 0x1e7   : > { %v1616_v34 = vpop.f32.mrf.mxu2  ;;  %v1645_v36 = vpop.f32.mrf.mxu3 }
 0x1e8   : > { %v1590_v37 = vpop.f32.mrf.mxu1  ;;  %v1661_v13 = vadd.f32 %v1616_v34, %v4504_v5  ;;  %v1662_v56 = vadd.f32 %v1645_v36, %v1322_v31  ;;  %v2057_v36 = vld [vmem:[%s3242_s9 + $0x70] sm:$0xff] }
 0x1e9   : > { %v1664_v20 = vadd.f32 %v1590_v37, %v4489_v32  ;;  %v1325_v32 = vadd.f32 %v4518_v55, %v4487_v22 }
 0x1ef   : > { %v4525_v40 = vpop.f32.mrf.mxu2  ;;  %v4528_v41 = vpop.f32.mrf.mxu3 }
 0x1f0   : > { %v1921_v42 = vpop.f32.mrf.mxu1  ;;  %v1665_v27 = vadd.f32 %v4525_v40, %v4512_v0  ;;  %v1666_v33 = vadd.f32 %v4528_v41, %v1325_v32 }
 0x1f1   : > { %v1992_v46 = vadd.f32 %v1921_v42, %v1652_v44  ;;  %v2058_v42 = vld [vmem:[%s3242_s9 + $0x78] sm:$0xff] }
 0x1f3   : > { %v2060_v39 = vadd.f32 %v2044_v43, %v1992_v46 }
 0x1f5   : > { %2076 = vst [vmem:[%s3248_s23 + $0x8] sm:$0xff] %v2060_v39 }
 0x1f7   : > { %v1950_v49 = vpop.f32.mrf.mxu2  ;;  %v1979_v2 = vpop.f32.mrf.mxu3 }
 0x1f8   : > { %v1993_v1 = vadd.f32 %v1950_v49, %v1653_v53  ;;  %v1994_v7 = vadd.f32 %v1979_v2, %v1654_v54  ;;  %v1924_v8 = vpop.f32.mrf.mxu1 }
 0x1f9   : > { %v1996_v38 = vadd.f32 %v1924_v8, %v1656_v15 }
 0x1fa   : > { %v2061_v23 = vadd.f32 %v2045_v61, %v1993_v1  ;;  %v2062_v9 = vadd.f32 %v2046_v3, %v1994_v7 }
 0x1fb   : > { %v2064_v35 = vadd.f32 %v2048_v48, %v1996_v38 }
 0x1fc   : > { %2077 = vst [vmem:[%s3248_s23 + $0x10] sm:$0xff] %v2061_v23 }
 0x1fd   : > { %2078 = vst [vmem:[%s3248_s23 + $0x18] sm:$0xff] %v2062_v9 }
 0x1fe   : > { %2080 = vst [vmem:[%s3248_s23 + $0x28] sm:$0xff] %v2064_v35 }
 0x1ff   : > { %v1953_v14 = vpop.f32.mrf.mxu2  ;;  %v1982_v18 = vpop.f32.mrf.mxu3 }
 0x200   : > { %v1997_v17 = vadd.f32 %v1953_v14, %v1657_v28  ;;  %v1998_v51 = vadd.f32 %v1982_v18, %v1658_v52  ;;  %v1927_v60 = vpop.f32.mrf.mxu1 }
 0x201   : > { %v2000_v62 = vadd.f32 %v1927_v60, %v1660_v57 }
 0x202   : > { %v2065_v59 = vadd.f32 %v2049_v63, %v1997_v17  ;;  %v2066_v45 = vadd.f32 %v2050_v50, %v1998_v51 }
 0x203   : > { %v2068_v4 = vadd.f32 %v2052_v24, %v2000_v62 }
 0x204   : > { %2081 = vst [vmem:[%s3248_s23 + $0x30] sm:$0xff] %v2065_v59 }
 0x205   : > { %2082 = vst [vmem:[%s3248_s23 + $0x38] sm:$0xff] %v2066_v45 }
 0x206   : > { %2084 = vst [vmem:[%s3248_s23 + $0x48] sm:$0xff] %v2068_v4 }
 0x207   : > { %v1956_v58 = vpop.f32.mrf.mxu2  ;;  %v1985_v10 = vpop.f32.mrf.mxu3 }
 0x208   : > { %v2001_v6 = vadd.f32 %v1956_v58, %v1661_v13  ;;  %v2002_v26 = vadd.f32 %v1985_v10, %v1662_v56  ;;  %v1930_v29 = vpop.f32.mrf.mxu1 }
 0x209   : > { %v2004_v12 = vadd.f32 %v1930_v29, %v1664_v20 }
 0x20a   : > { %v2069_v5 = vadd.f32 %v2053_v19, %v2001_v6  ;;  %v2070_v16 = vadd.f32 %v2054_v25, %v2002_v26 }
 0x20b   : > { %v2072_v30 = vadd.f32 %v2056_v21, %v2004_v12 }
 0x20c   : > { %2085 = vst [vmem:[%s3248_s23 + $0x50] sm:$0xff] %v2069_v5 }
 0x20d   : > { %2086 = vst [vmem:[%s3248_s23 + $0x58] sm:$0xff] %v2070_v16 }
 0x20e   : > { %2088 = vst [vmem:[%s3248_s23 + $0x68] sm:$0xff] %v2072_v30 }
 0x20f   : > { %v1959_v34 = vpop.f32.mrf.mxu2  ;;  %v1988_v44 = vpop.f32.mrf.mxu3 }
 0x210   : > { %v2005_v37 = vadd.f32 %v1959_v34, %v1665_v27  ;;  %v2006_v43 = vadd.f32 %v1988_v44, %v1666_v33 }
 0x212   : > { %v2073_v22 = vadd.f32 %v2057_v36, %v2005_v37  ;;  %v2074_v55 = vadd.f32 %v2058_v42, %v2006_v43 }
 0x214   : > { %2089 = vst [vmem:[%s3248_s23 + $0x70] sm:$0xff] %v2073_v22 }
 0x215   : > { %2090 = vst [vmem:[%s3248_s23 + $0x78] sm:$0xff] %v2074_v55 }
 0x216   : > { %3001 = shalt.err (!%p2998_p13)
}
 0x217   : > { %s3087_s10 = smov 512   ;;  %s3088_s23 = smov 1536  }
 0x218   : > { %s3089_s11 = smov 32  }
 0x219   : > { %2820 = dma.vmem_to_hbm [thread:$0]  (%p3180_p9), %s2110_s12, 2048, %s2112_s24, %s2092_s27, %s3087_s10, %s3088_s23, %s3089_s11  }
 0x21a PF: > { %s4640_s13 = sld [smem:[#allocation12_spill]]  ;;  %p2834_p0 = scmp.ge.s32.totalorder %s3076_s22, 2 }
 0x21c   : > { %p2830_p1 = pnand %p2834_p0, %p3186_p12 }
 0x21e   : > { %p2831_p2 = pneg %p2830_p1 }
 0x220   : > { %s2126_s17 = sand.u32 1, %s4640_s13  }
 0x221   : > { %s2127_s0 = scalar_lea.sflag [#allocation5], %s2126_s17 }
 0x222   : > { %3043 = dma.done.wait (%p2831_p2), %s2127_s0, 2048  }
 0x223   : > { %3045 = vsyncadd (%p2831_p2), %s2127_s0, 4294965248  ;;  %s23_s22 = sadd.s32 1, %s3076_s22   ;;  %s4642_s18 = sld [smem:[#allocation13_spill]] }
 0x224   : > { %p20_p3 = scmp.ge.s32.totalorder %s23_s22, 8   ;;  %s4643_s17 = sld [smem:[#allocation17_spill]] }
 0x225   : > { %s4644_s5 = sld [smem:[#allocation14_spill]]  ;;  %s4646_s15 = smov %s3052_s16 }
 0x226   : > { %s4645_s8 = sld [smem:[#allocation15_spill]]  ;;  %s4649_s19 = smov %s3072_s21 }
 0x228   :  { %22 = sbr.rel (!%p20_p3) target bundleno = 11 (0xb), region = 104 }
 0x229   : > { %s4647_s16 = smov %s4642_s18  ;;  %s4648_s18 = smov %s3068_s20 }
 0x22b   : > { %s4650_s20 = smov %s4644_s5 }
 0x22c   : > { %s4651_s21 = smov %s4645_s8 }
 0x22d   :  { %2133 = vsyncpa [#allocation4], 1 }
 0x22e   :  { %2135 = vsyncpa [#allocation4 + $0x1], 1 }
 0x22f   :  { %2136 = vsyncpa [#allocation7], 1 }
 0x230   :  { %2138 = vsyncpa [#allocation7 + $0x1], 1 }
 0x231   :  { %2139 = vsyncpa [#allocation5], 1 }
 0x232   :  { %2141 = vsyncpa [#allocation5 + $0x1], 1 }

</bundles_post_ra>
